<compile_context>
chip_gen: v7x
topology: tpu7x:2x2x1
jax: 0.10.0
libtpu: 0.0.40
codegen_flags: <defaults>
</compile_context>

<pallas_src>
import functools

import jax
import jax.numpy as jnp
from jax.experimental import pallas as pl
from jax.experimental.pallas import tpu as pltpu


# ---------------------------------------------------------------------------
# Pallas kernel: fused  out = relu?(x @ w + b)   (bf16 operands, f32 accum)
# ---------------------------------------------------------------------------
def _gemm_bias_act_kernel(x_ref, w_ref, b_ref, o_ref, *, relu):
    acc = jnp.dot(x_ref[...], w_ref[...], preferred_element_type=jnp.float32)
    acc = acc + b_ref[...]                 # (1, N) f32 bias broadcasts over rows
    if relu:
        acc = jnp.maximum(acc, 0.0)
    o_ref[...] = acc.astype(o_ref.dtype)


def gemm_bias_act(x, w, b_row, *, relu, out_dtype, tile_m=512):
    """x: (M, K) bf16, w: (K, N) bf16, b_row: (1, N) f32 -> (M, N) out_dtype."""
    M, K = x.shape
    K2, N = w.shape
    assert K == K2 and b_row.shape == (1, N)

    # Either the whole M extent (no tiling) or an 8/16-aligned tile.
    tm = M if M <= tile_m else tile_m
    grid_m = pl.cdiv(M, tm)

    cost = pl.CostEstimate(
        flops=2 * M * K * N,
        transcendentals=0,
        bytes_accessed=(M * K * x.dtype.itemsize + K * N * w.dtype.itemsize
                        + N * 4 + M * N * jnp.dtype(out_dtype).itemsize),
    )
    return pl.pallas_call(
        functools.partial(_gemm_bias_act_kernel, relu=relu),
        out_shape=jax.ShapeDtypeStruct((M, N), out_dtype),
        grid=(grid_m,),
        in_specs=[
            pl.BlockSpec((tm, K), lambda i: (i, 0)),   # activations: M-tiled
            pl.BlockSpec((K, N), lambda i: (0, 0)),    # weights: VMEM-resident
            pl.BlockSpec((1, N), lambda i: (0, 0)),    # bias row
        ],
        out_specs=pl.BlockSpec((tm, N), lambda i: (i, 0)),
        compiler_params=pltpu.CompilerParams(
            dimension_semantics=("parallel",)),
        cost_estimate=cost,
    )(x, w, b_row)


# ---------------------------------------------------------------------------
# Pallas kernel: fused FC chain  q = (relu(relu(x@W1+b1)@W2+b2))@W3+b3
# All three weight matrices stay resident in VMEM; one launch, one HBM write.
# ---------------------------------------------------------------------------
def _fc_chain_kernel(x_ref, w1_ref, b1_ref, w2_ref, b2_ref, w3_ref, b3_ref,
                     o_ref):
    h = jnp.dot(x_ref[...], w1_ref[...], preferred_element_type=jnp.float32)
    h = jnp.maximum(h + b1_ref[...], 0.0)
    h = jnp.dot(h.astype(jnp.bfloat16), w2_ref[...],
                preferred_element_type=jnp.float32)
    h = jnp.maximum(h + b2_ref[...], 0.0)
    q = jnp.dot(h.astype(jnp.bfloat16), w3_ref[...],
                preferred_element_type=jnp.float32)
    o_ref[...] = (q + b3_ref[...]).astype(o_ref.dtype)


def fc_chain(x, w1, b1, w2, b2, w3, b3, *, tile_b=512):
    """x: (B, K1) bf16 -> (B, A) f32 with fc1/fc2/q_out fused in one kernel."""
    B, K1 = x.shape
    H1 = w1.shape[1]
    H2 = w2.shape[1]
    A = w3.shape[1]

    tb = B if B <= tile_b else tile_b
    grid_b = pl.cdiv(B, tb)

    cost = pl.CostEstimate(
        flops=2 * B * (K1 * H1 + H1 * H2 + H2 * A),
        transcendentals=0,
        bytes_accessed=(B * K1 * x.dtype.itemsize
                        + (K1 * H1 + H1 * H2 + H2 * A) * 2
                        + (H1 + H2 + A) * 4 + B * A * 4),
    )
    return pl.pallas_call(
        _fc_chain_kernel,
        out_shape=jax.ShapeDtypeStruct((B, A), jnp.float32),
        grid=(grid_b,),
        in_specs=[
            pl.BlockSpec((tb, K1), lambda i: (i, 0)),
            pl.BlockSpec((K1, H1), lambda i: (0, 0)),
            pl.BlockSpec((1, H1), lambda i: (0, 0)),
            pl.BlockSpec((H1, H2), lambda i: (0, 0)),
            pl.BlockSpec((1, H2), lambda i: (0, 0)),
            pl.BlockSpec((H2, A), lambda i: (0, 0)),
            pl.BlockSpec((1, A), lambda i: (0, 0)),
        ],
        out_specs=pl.BlockSpec((tb, A), lambda i: (i, 0)),
        compiler_params=pltpu.CompilerParams(
            dimension_semantics=("parallel",)),
        cost_estimate=cost,
    )(x, w1, b1, w2, b2, w3, b3)


# ---------------------------------------------------------------------------
# Conv2d (valid padding, stride s) via NHWC im2col + Pallas GEMM
# ---------------------------------------------------------------------------
def _im2col_nhwc(x, kh, kw, stride):
    """x: (B, H, W, C) -> (B*OH*OW, kh*kw*C) with K-order (kh, kw, C)."""
    B, H, W, C = x.shape
    OH = (H - kh) // stride + 1
    OW = (W - kw) // stride + 1
    patches = []
    for i in range(kh):
        for j in range(kw):
            patches.append(
                x[:, i:i + stride * OH:stride, j:j + stride * OW:stride, :])
    p = jnp.stack(patches, axis=3)                # (B, OH, OW, kh*kw, C)
    return p.reshape(B * OH * OW, kh * kw * C), OH, OW


def conv2d_relu_nhwc(x, w_mat, b_row, *, kh, kw, stride):
    """x: (B,H,W,Cin) bf16; w_mat: (kh*kw*Cin, Cout) bf16; b_row: (1, Cout) f32."""
    B = x.shape[0]
    cols, OH, OW = _im2col_nhwc(x, kh, kw, stride)
    out = gemm_bias_act(cols, w_mat, b_row, relu=True, out_dtype=jnp.bfloat16)
    return out.reshape(B, OH, OW, w_mat.shape[1])


# ---------------------------------------------------------------------------
# Parameters: PyTorch-layout init + one-time packing (layout + bf16)
# ---------------------------------------------------------------------------
def _conv_out_hw(hw, k, s):
    return (hw - k) // s + 1


def conv_output_geometry(input_shape):
    H, W = input_shape
    oh = _conv_out_hw(_conv_out_hw(_conv_out_hw(H, 5, 2), 3, 2), 3, 2)
    ow = _conv_out_hw(_conv_out_hw(_conv_out_hw(W, 5, 2), 3, 2), 3, 2)
    return oh, ow


def init_params(key, input_shape=(30, 30), num_actions=4):
    """PyTorch-layout parameters (same structure/init scheme as the nn.Module)."""
    oh, ow = conv_output_geometry(input_shape)
    conv_out_size = 64 * oh * ow
    keys = jax.random.split(key, 12)

    def u(k, shape, fan_in):
        bound = 1.0 / jnp.sqrt(fan_in)
        return jax.random.uniform(k, shape, jnp.float32, -bound, bound)

    params = {
        "conv1_w": u(keys[0], (16, 1, 5, 5), 1 * 5 * 5),
        "conv1_b": u(keys[1], (16,), 1 * 5 * 5),
        "conv2_w": u(keys[2], (32, 16, 3, 3), 16 * 3 * 3),
        "conv2_b": u(keys[3], (32,), 16 * 3 * 3),
        "conv3_w": u(keys[4], (64, 32, 3, 3), 32 * 3 * 3),
        "conv3_b": u(keys[5], (64,), 32 * 3 * 3),
        "fc1_w": u(keys[6], (conv_out_size, 256), conv_out_size),
        "fc1_b": u(keys[7], (256,), conv_out_size),
        "fc2_w": u(keys[8], (256, 128), 256),
        "fc2_b": u(keys[9], (128,), 256),
        "q_w": u(keys[10], (128, num_actions), 128),
        "q_b": u(keys[11], (num_actions,), 128),
    }
    return params, conv_out_size


def pack_params(params, input_shape=(30, 30)):
    """One-time layout conversion + bf16 cast (outside the forward hot path)."""
    oh, ow = conv_output_geometry(input_shape)

    def conv_mat(w):   # (Cout, Cin, kh, kw) -> (kh*kw*Cin, Cout), bf16
        cout, cin, kh, kw = w.shape
        return (w.transpose(2, 3, 1, 0)
                .reshape(kh * kw * cin, cout).astype(jnp.bfloat16))

    def brow(b):
        return b.astype(jnp.float32).reshape(1, -1)

    # fc1 rows permuted from torch's NCHW flatten order (c, oh, ow) to the
    # kernel's NHWC flatten order (oh, ow, c) so .view(B, -1) semantics hold.
    fc1_w = params["fc1_w"].reshape(64, oh, ow, -1).transpose(1, 2, 0, 3)
    fc1_w = fc1_w.reshape(64 * oh * ow, -1)

    return {
        "conv1_w": conv_mat(params["conv1_w"]), "conv1_b": brow(params["conv1_b"]),
        "conv2_w": conv_mat(params["conv2_w"]), "conv2_b": brow(params["conv2_b"]),
        "conv3_w": conv_mat(params["conv3_w"]), "conv3_b": brow(params["conv3_b"]),
        "fc1_w": fc1_w.astype(jnp.bfloat16), "fc1_b": brow(params["fc1_b"]),
        "fc2_w": params["fc2_w"].astype(jnp.bfloat16), "fc2_b": brow(params["fc2_b"]),
        "q_w": params["q_w"].astype(jnp.bfloat16), "q_b": brow(params["q_b"]),
    }


# ---------------------------------------------------------------------------
# Forward pass
# ---------------------------------------------------------------------------
def q_network_forward(packed, state):
    """state: (B, 1, H, W) f32 (NCHW, as PyTorch) -> (B, num_actions) f32."""
    x = jnp.transpose(state, (0, 2, 3, 1)).astype(jnp.bfloat16)   # NHWC, bf16
    x = conv2d_relu_nhwc(x, packed["conv1_w"], packed["conv1_b"], kh=5, kw=5, stride=2)
    x = conv2d_relu_nhwc(x, packed["conv2_w"], packed["conv2_b"], kh=3, kw=3, stride=2)
    x = conv2d_relu_nhwc(x, packed["conv3_w"], packed["conv3_b"], kh=3, kw=3, stride=2)
    B = x.shape[0]
    x = x.reshape(B, -1)          # NHWC flatten; fc1_w rows were pre-permuted
    return fc_chain(x, packed["fc1_w"], packed["fc1_b"],
                    packed["fc2_w"], packed["fc2_b"],
                    packed["q_w"], packed["q_b"])


# ---------------------------------------------------------------------------
# Plain-JAX f32 reference (torch semantics) for a sanity check
# ---------------------------------------------------------------------------
def reference_forward(params, state):
    def conv(x, w, b, stride):
        y = jax.lax.conv_general_dilated(
            x, w, window_strides=(stride, stride), padding="VALID",
            dimension_numbers=("NCHW", "OIHW", "NCHW"))
        return jnp.maximum(y + b[None, :, None, None], 0.0)

    x = conv(state, params["conv1_w"], params["conv1_b"], 2)
    x = conv(x, params["conv2_w"], params["conv2_b"], 2)
    x = conv(x, params["conv3_w"], params["conv3_b"], 2)
    x = x.reshape(x.shape[0], -1)
    x = jnp.maximum(x @ params["fc1_w"] + params["fc1_b"], 0.0)
    x = jnp.maximum(x @ params["fc2_w"] + params["fc2_b"], 0.0)
    return x @ params["q_w"] + params["q_b"]


if __name__ == "__main__":
    key = jax.random.PRNGKey(0)
    pkey, xkey = jax.random.split(key)

    # Small shapes: batch=2, single-channel 30x30 images (conv stack -> 2x2x64).
    input_shape = (30, 30)
    num_actions = 4
    batch = 2

    params, conv_out_size = init_params(pkey, input_shape, num_actions)
    packed = pack_params(params, input_shape)

    state = jax.random.normal(xkey, (batch, 1, *input_shape), jnp.float32)

    fwd = jax.jit(q_network_forward)
    q_values = fwd(packed, state)
    jax.block_until_ready(q_values)

    assert q_values.shape == (batch, num_actions)
    assert q_values.dtype == jnp.float32
    assert bool(jnp.all(jnp.isfinite(q_values)))

    # Sanity check against the f32 reference (loose tol: bf16 MXU operands).
    q_ref = reference_forward(params, state)
    max_err = float(jnp.max(jnp.abs(q_values - q_ref)))
    assert max_err < 5e-2, f"mismatch vs reference: {max_err}"

    print("KERNEL_OK")
</pallas_src>

<mosaic_0001>
module attributes {stable_mosaic.version = 11 : i64} {
  func.func @_gemm_bias_act_kernel(%arg0: i32, %arg1: memref<338x25xbf16, #tpu.memory_space<vmem>>, %arg2: memref<25x16xbf16, #tpu.memory_space<vmem>>, %arg3: memref<1x16xf32, #tpu.memory_space<vmem>>, %arg4: memref<338x16xbf16, #tpu.memory_space<vmem>>) attributes {dimension_semantics = [#tpu.dimension_semantics<parallel>], iteration_bounds = array<i64: 1>, scalar_prefetch = 0 : i64, scratch_operands = 0 : i64, tpu.core_type = #tpu.core_type<tc>, window_params = [{transform_indices = @transform_0, window_bounds = array<i64: 338, 25>}, {pipeline_mode = #tpu.pipeline_mode<synchronous>, transform_indices = @transform_1, window_bounds = array<i64: 25, 16>}, {pipeline_mode = #tpu.pipeline_mode<synchronous>, transform_indices = @transform_2, window_bounds = array<i64: 1, 16>}, {transform_indices = @transform_3, window_bounds = array<i64: 338, 16>}]} {
    %c0 = arith.constant 0 : index
    %c0_0 = arith.constant 0 : index
    %0 = vector.load %arg1[%c0, %c0_0] : memref<338x25xbf16, #tpu.memory_space<vmem>>, vector<338x25xbf16>
    %c0_1 = arith.constant 0 : index
    %c0_2 = arith.constant 0 : index
    %1 = vector.load %arg2[%c0_1, %c0_2] : memref<25x16xbf16, #tpu.memory_space<vmem>>, vector<25x16xbf16>
    %cst = arith.constant dense<0.000000e+00> : vector<338x16xf32>
    %2 = tpu.matmul %0, %1, %cst {dimension_numbers = #tpu.dot_dimension_numbers<[1], [0], [0], [1], [0, 0, 1, 1], [], []>} : vector<338x25xbf16>, vector<25x16xbf16>, vector<338x16xf32> -> vector<338x16xf32>
    %c0_3 = arith.constant 0 : index
    %c0_4 = arith.constant 0 : index
    %3 = vector.load %arg3[%c0_3, %c0_4] : memref<1x16xf32, #tpu.memory_space<vmem>>, vector<1x16xf32>
    %4 = vector.broadcast %3 : vector<1x16xf32> to vector<338x16xf32>
    %5 = arith.addf %2, %4 : vector<338x16xf32>
    %cst_5 = arith.constant 0.000000e+00 : f32
    %6 = vector.broadcast %cst_5 : f32 to vector<338x16xf32>
    %7 = arith.maximumf %5, %6 : vector<338x16xf32>
    %8 = arith.truncf %7 : vector<338x16xf32> to vector<338x16xbf16>
    %c0_6 = arith.constant 0 : index
    %c0_7 = arith.constant 0 : index
    %9 = vector.load %arg4[%c0_6, %c0_7] : memref<338x16xbf16, #tpu.memory_space<vmem>>, vector<338x16xbf16>
    tpu.vector_store %arg4[%c0_6, %c0_7], %8 {strides = array<i32>} : memref<338x16xbf16, #tpu.memory_space<vmem>>, vector<338x16xbf16>,
    return
  }
  func.func @transform_0(%arg0: i32) -> (i32, i32) {
    %c0_i32 = arith.constant 0 : i32
    %c0_i32_0 = arith.constant 0 : i32
    return %arg0, %c0_i32 : i32, i32
  }
  func.func @transform_1(%arg0: i32) -> (i32, i32) {
    %c0_i32 = arith.constant 0 : i32
    %c0_i32_0 = arith.constant 0 : i32
    %c0_i32_1 = arith.constant 0 : i32
    return %c0_i32, %c0_i32_0 : i32, i32
  }
  func.func @transform_2(%arg0: i32) -> (i32, i32) {
    %c0_i32 = arith.constant 0 : i32
    %c0_i32_0 = arith.constant 0 : i32
    %c0_i32_1 = arith.constant 0 : i32
    return %c0_i32, %c0_i32_0 : i32, i32
  }
  func.func @transform_3(%arg0: i32) -> (i32, i32) {
    %c0_i32 = arith.constant 0 : i32
    %c0_i32_0 = arith.constant 0 : i32
    return %arg0, %c0_i32 : i32, i32
  }
}

module attributes {stable_mosaic.version = 11 : i64} {
  func.func @_gemm_bias_act_kernel(%arg0: i32, %arg1: memref<72x144xbf16, #tpu.memory_space<vmem>>, %arg2: memref<144x32xbf16, #tpu.memory_space<vmem>>, %arg3: memref<1x32xf32, #tpu.memory_space<vmem>>, %arg4: memref<72x32xbf16, #tpu.memory_space<vmem>>) attributes {dimension_semantics = [#tpu.dimension_semantics<parallel>], iteration_bounds = array<i64: 1>, scalar_prefetch = 0 : i64, scratch_operands = 0 : i64, tpu.core_type = #tpu.core_type<tc>, window_params = [{transform_indices = @transform_0, window_bounds = array<i64: 72, 144>}, {pipeline_mode = #tpu.pipeline_mode<synchronous>, transform_indices = @transform_1, window_bounds = array<i64: 144, 32>}, {pipeline_mode = #tpu.pipeline_mode<synchronous>, transform_indices = @transform_2, window_bounds = array<i64: 1, 32>}, {transform_indices = @transform_3, window_bounds = array<i64: 72, 32>}]} {
    %c0 = arith.constant 0 : index
    %c0_0 = arith.constant 0 : index
    %0 = vector.load %arg1[%c0, %c0_0] : memref<72x144xbf16, #tpu.memory_space<vmem>>, vector<72x144xbf16>
    %c0_1 = arith.constant 0 : index
    %c0_2 = arith.constant 0 : index
    %1 = vector.load %arg2[%c0_1, %c0_2] : memref<144x32xbf16, #tpu.memory_space<vmem>>, vector<144x32xbf16>
    %cst = arith.constant dense<0.000000e+00> : vector<72x32xf32>
    %2 = tpu.matmul %0, %1, %cst {dimension_numbers = #tpu.dot_dimension_numbers<[1], [0], [0], [1], [0, 0, 1, 1], [], []>} : vector<72x144xbf16>, vector<144x32xbf16>, vector<72x32xf32> -> vector<72x32xf32>
    %c0_3 = arith.constant 0 : index
    %c0_4 = arith.constant 0 : index
    %3 = vector.load %arg3[%c0_3, %c0_4] : memref<1x32xf32, #tpu.memory_space<vmem>>, vector<1x32xf32>
    %4 = vector.broadcast %3 : vector<1x32xf32> to vector<72x32xf32>
    %5 = arith.addf %2, %4 : vector<72x32xf32>
    %cst_5 = arith.constant 0.000000e+00 : f32
    %6 = vector.broadcast %cst_5 : f32 to vector<72x32xf32>
    %7 = arith.maximumf %5, %6 : vector<72x32xf32>
    %8 = arith.truncf %7 : vector<72x32xf32> to vector<72x32xbf16>
    %c0_6 = arith.constant 0 : index
    %c0_7 = arith.constant 0 : index
    %9 = vector.load %arg4[%c0_6, %c0_7] : memref<72x32xbf16, #tpu.memory_space<vmem>>, vector<72x32xbf16>
    tpu.vector_store %arg4[%c0_6, %c0_7], %8 {strides = array<i32>} : memref<72x32xbf16, #tpu.memory_space<vmem>>, vector<72x32xbf16>,
    return
  }
  func.func @transform_0(%arg0: i32) -> (i32, i32) {
    %c0_i32 = arith.constant 0 : i32
    %c0_i32_0 = arith.constant 0 : i32
    return %arg0, %c0_i32 : i32, i32
  }
  func.func @transform_1(%arg0: i32) -> (i32, i32) {
    %c0_i32 = arith.constant 0 : i32
    %c0_i32_0 = arith.constant 0 : i32
    %c0_i32_1 = arith.constant 0 : i32
    return %c0_i32, %c0_i32_0 : i32, i32
  }
  func.func @transform_2(%arg0: i32) -> (i32, i32) {
    %c0_i32 = arith.constant 0 : i32
    %c0_i32_0 = arith.constant 0 : i32
    %c0_i32_1 = arith.constant 0 : i32
    return %c0_i32, %c0_i32_0 : i32, i32
  }
  func.func @transform_3(%arg0: i32) -> (i32, i32) {
    %c0_i32 = arith.constant 0 : i32
    %c0_i32_0 = arith.constant 0 : i32
    return %arg0, %c0_i32 : i32, i32
  }
}

module attributes {stable_mosaic.version = 11 : i64} {
  func.func @_gemm_bias_act_kernel(%arg0: i32, %arg1: memref<8x288xbf16, #tpu.memory_space<vmem>>, %arg2: memref<288x64xbf16, #tpu.memory_space<vmem>>, %arg3: memref<1x64xf32, #tpu.memory_space<vmem>>, %arg4: memref<8x64xbf16, #tpu.memory_space<vmem>>) attributes {dimension_semantics = [#tpu.dimension_semantics<parallel>], iteration_bounds = array<i64: 1>, scalar_prefetch = 0 : i64, scratch_operands = 0 : i64, tpu.core_type = #tpu.core_type<tc>, window_params = [{transform_indices = @transform_0, window_bounds = array<i64: 8, 288>}, {pipeline_mode = #tpu.pipeline_mode<synchronous>, transform_indices = @transform_1, window_bounds = array<i64: 288, 64>}, {pipeline_mode = #tpu.pipeline_mode<synchronous>, transform_indices = @transform_2, window_bounds = array<i64: 1, 64>}, {transform_indices = @transform_3, window_bounds = array<i64: 8, 64>}]} {
    %c0 = arith.constant 0 : index
    %c0_0 = arith.constant 0 : index
    %0 = vector.load %arg1[%c0, %c0_0] : memref<8x288xbf16, #tpu.memory_space<vmem>>, vector<8x288xbf16>
    %c0_1 = arith.constant 0 : index
    %c0_2 = arith.constant 0 : index
    %1 = vector.load %arg2[%c0_1, %c0_2] : memref<288x64xbf16, #tpu.memory_space<vmem>>, vector<288x64xbf16>
    %cst = arith.constant dense<0.000000e+00> : vector<8x64xf32>
    %2 = tpu.matmul %0, %1, %cst {dimension_numbers = #tpu.dot_dimension_numbers<[1], [0], [0], [1], [0, 0, 1, 1], [], []>} : vector<8x288xbf16>, vector<288x64xbf16>, vector<8x64xf32> -> vector<8x64xf32>
    %c0_3 = arith.constant 0 : index
    %c0_4 = arith.constant 0 : index
    %3 = vector.load %arg3[%c0_3, %c0_4] : memref<1x64xf32, #tpu.memory_space<vmem>>, vector<1x64xf32>
    %4 = vector.broadcast %3 : vector<1x64xf32> to vector<8x64xf32>
    %5 = arith.addf %2, %4 : vector<8x64xf32>
    %cst_5 = arith.constant 0.000000e+00 : f32
    %6 = vector.broadcast %cst_5 : f32 to vector<8x64xf32>
    %7 = arith.maximumf %5, %6 : vector<8x64xf32>
    %8 = arith.truncf %7 : vector<8x64xf32> to vector<8x64xbf16>
    %c0_6 = arith.constant 0 : index
    %c0_7 = arith.constant 0 : index
    %9 = vector.load %arg4[%c0_6, %c0_7] : memref<8x64xbf16, #tpu.memory_space<vmem>>, vector<8x64xbf16>
    tpu.vector_store %arg4[%c0_6, %c0_7], %8 {strides = array<i32>} : memref<8x64xbf16, #tpu.memory_space<vmem>>, vector<8x64xbf16>,
    return
  }
  func.func @transform_0(%arg0: i32) -> (i32, i32) {
    %c0_i32 = arith.constant 0 : i32
    %c0_i32_0 = arith.constant 0 : i32
    return %arg0, %c0_i32 : i32, i32
  }
  func.func @transform_1(%arg0: i32) -> (i32, i32) {
    %c0_i32 = arith.constant 0 : i32
    %c0_i32_0 = arith.constant 0 : i32
    %c0_i32_1 = arith.constant 0 : i32
    return %c0_i32, %c0_i32_0 : i32, i32
  }
  func.func @transform_2(%arg0: i32) -> (i32, i32) {
    %c0_i32 = arith.constant 0 : i32
    %c0_i32_0 = arith.constant 0 : i32
    %c0_i32_1 = arith.constant 0 : i32
    return %c0_i32, %c0_i32_0 : i32, i32
  }
  func.func @transform_3(%arg0: i32) -> (i32, i32) {
    %c0_i32 = arith.constant 0 : i32
    %c0_i32_0 = arith.constant 0 : i32
    return %arg0, %c0_i32 : i32, i32
  }
}

module attributes {stable_mosaic.version = 11 : i64} {
  func.func @_fc_chain_kernel(%arg0: i32, %arg1: memref<2x256xbf16, #tpu.memory_space<vmem>>, %arg2: memref<256x256xbf16, #tpu.memory_space<vmem>>, %arg3: memref<1x256xf32, #tpu.memory_space<vmem>>, %arg4: memref<256x128xbf16, #tpu.memory_space<vmem>>, %arg5: memref<1x128xf32, #tpu.memory_space<vmem>>, %arg6: memref<128x4xbf16, #tpu.memory_space<vmem>>, %arg7: memref<1x4xf32, #tpu.memory_space<vmem>>, %arg8: memref<2x4xf32, #tpu.memory_space<vmem>>) attributes {dimension_semantics = [#tpu.dimension_semantics<parallel>], iteration_bounds = array<i64: 1>, scalar_prefetch = 0 : i64, scratch_operands = 0 : i64, tpu.core_type = #tpu.core_type<tc>, window_params = [{transform_indices = @transform_0, window_bounds = array<i64: 2, 256>}, {pipeline_mode = #tpu.pipeline_mode<synchronous>, transform_indices = @transform_1, window_bounds = array<i64: 256, 256>}, {pipeline_mode = #tpu.pipeline_mode<synchronous>, transform_indices = @transform_2, window_bounds = array<i64: 1, 256>}, {pipeline_mode = #tpu.pipeline_mode<synchronous>, transform_indices = @transform_3, window_bounds = array<i64: 256, 128>}, {pipeline_mode = #tpu.pipeline_mode<synchronous>, transform_indices = @transform_4, window_bounds = array<i64: 1, 128>}, {pipeline_mode = #tpu.pipeline_mode<synchronous>, transform_indices = @transform_5, window_bounds = array<i64: 128, 4>}, {pipeline_mode = #tpu.pipeline_mode<synchronous>, transform_indices = @transform_6, window_bounds = array<i64: 1, 4>}, {transform_indices = @transform_7, window_bounds = array<i64: 2, 4>}]} {
    %c0 = arith.constant 0 : index
    %c0_0 = arith.constant 0 : index
    %0 = vector.load %arg1[%c0, %c0_0] : memref<2x256xbf16, #tpu.memory_space<vmem>>, vector<2x256xbf16>
    %c0_1 = arith.constant 0 : index
    %c0_2 = arith.constant 0 : index
    %1 = vector.load %arg2[%c0_1, %c0_2] : memref<256x256xbf16, #tpu.memory_space<vmem>>, vector<256x256xbf16>
    %cst = arith.constant dense<0.000000e+00> : vector<2x256xf32>
    %2 = tpu.matmul %0, %1, %cst {dimension_numbers = #tpu.dot_dimension_numbers<[1], [0], [0], [1], [0, 0, 1, 1], [], []>} : vector<2x256xbf16>, vector<256x256xbf16>, vector<2x256xf32> -> vector<2x256xf32>
    %c0_3 = arith.constant 0 : index
    %c0_4 = arith.constant 0 : index
    %3 = vector.load %arg3[%c0_3, %c0_4] : memref<1x256xf32, #tpu.memory_space<vmem>>, vector<1x256xf32>
    %4 = vector.broadcast %3 : vector<1x256xf32> to vector<2x256xf32>
    %5 = arith.addf %2, %4 : vector<2x256xf32>
    %cst_5 = arith.constant 0.000000e+00 : f32
    %6 = vector.broadcast %cst_5 : f32 to vector<2x256xf32>
    %7 = arith.maximumf %5, %6 : vector<2x256xf32>
    %8 = arith.truncf %7 : vector<2x256xf32> to vector<2x256xbf16>
    %c0_6 = arith.constant 0 : index
    %c0_7 = arith.constant 0 : index
    %9 = vector.load %arg4[%c0_6, %c0_7] : memref<256x128xbf16, #tpu.memory_space<vmem>>, vector<256x128xbf16>
    %cst_8 = arith.constant dense<0.000000e+00> : vector<2x128xf32>
    %10 = tpu.matmul %8, %9, %cst_8 {dimension_numbers = #tpu.dot_dimension_numbers<[1], [0], [0], [1], [0, 0, 1, 1], [], []>} : vector<2x256xbf16>, vector<256x128xbf16>, vector<2x128xf32> -> vector<2x128xf32>
    %c0_9 = arith.constant 0 : index
    %c0_10 = arith.constant 0 : index
    %11 = vector.load %arg5[%c0_9, %c0_10] : memref<1x128xf32, #tpu.memory_space<vmem>>, vector<1x128xf32>
    %12 = vector.broadcast %11 : vector<1x128xf32> to vector<2x128xf32>
    %13 = arith.addf %10, %12 : vector<2x128xf32>
    %cst_11 = arith.constant 0.000000e+00 : f32
    %14 = vector.broadcast %cst_11 : f32 to vector<2x128xf32>
    %15 = arith.maximumf %13, %14 : vector<2x128xf32>
    %16 = arith.truncf %15 : vector<2x128xf32> to vector<2x128xbf16>
    %c0_12 = arith.constant 0 : index
    %c0_13 = arith.constant 0 : index
    %17 = vector.load %arg6[%c0_12, %c0_13] : memref<128x4xbf16, #tpu.memory_space<vmem>>, vector<128x4xbf16>
    %cst_14 = arith.constant dense<0.000000e+00> : vector<2x4xf32>
    %18 = tpu.matmul %16, %17, %cst_14 {dimension_numbers = #tpu.dot_dimension_numbers<[1], [0], [0], [1], [0, 0, 1, 1], [], []>} : vector<2x128xbf16>, vector<128x4xbf16>, vector<2x4xf32> -> vector<2x4xf32>
    %c0_15 = arith.constant 0 : index
    %c0_16 = arith.constant 0 : index
    %19 = vector.load %arg7[%c0_15, %c0_16] : memref<1x4xf32, #tpu.memory_space<vmem>>, vector<1x4xf32>
    %20 = vector.broadcast %19 : vector<1x4xf32> to vector<2x4xf32>
    %21 = arith.addf %18, %20 : vector<2x4xf32>
    %c0_17 = arith.constant 0 : index
    %c0_18 = arith.constant 0 : index
    %22 = vector.load %arg8[%c0_17, %c0_18] : memref<2x4xf32, #tpu.memory_space<vmem>>, vector<2x4xf32>
    tpu.vector_store %arg8[%c0_17, %c0_18], %21 {strides = array<i32>} : memref<2x4xf32, #tpu.memory_space<vmem>>, vector<2x4xf32>,
    return
  }
  func.func @transform_0(%arg0: i32) -> (i32, i32) {
    %c0_i32 = arith.constant 0 : i32
    %c0_i32_0 = arith.constant 0 : i32
    return %arg0, %c0_i32 : i32, i32
  }
  func.func @transform_1(%arg0: i32) -> (i32, i32) {
    %c0_i32 = arith.constant 0 : i32
    %c0_i32_0 = arith.constant 0 : i32
    %c0_i32_1 = arith.constant 0 : i32
    return %c0_i32, %c0_i32_0 : i32, i32
  }
  func.func @transform_2(%arg0: i32) -> (i32, i32) {
    %c0_i32 = arith.constant 0 : i32
    %c0_i32_0 = arith.constant 0 : i32
    %c0_i32_1 = arith.constant 0 : i32
    return %c0_i32, %c0_i32_0 : i32, i32
  }
  func.func @transform_3(%arg0: i32) -> (i32, i32) {
    %c0_i32 = arith.constant 0 : i32
    %c0_i32_0 = arith.constant 0 : i32
    %c0_i32_1 = arith.constant 0 : i32
    return %c0_i32, %c0_i32_0 : i32, i32
  }
  func.func @transform_4(%arg0: i32) -> (i32, i32) {
    %c0_i32 = arith.constant 0 : i32
    %c0_i32_0 = arith.constant 0 : i32
    %c0_i32_1 = arith.constant 0 : i32
    return %c0_i32, %c0_i32_0 : i32, i32
  }
  func.func @transform_5(%arg0: i32) -> (i32, i32) {
    %c0_i32 = arith.constant 0 : i32
    %c0_i32_0 = arith.constant 0 : i32
    %c0_i32_1 = arith.constant 0 : i32
    return %c0_i32, %c0_i32_0 : i32, i32
  }
  func.func @transform_6(%arg0: i32) -> (i32, i32) {
    %c0_i32 = arith.constant 0 : i32
    %c0_i32_0 = arith.constant 0 : i32
    %c0_i32_1 = arith.constant 0 : i32
    return %c0_i32, %c0_i32_0 : i32, i32
  }
  func.func @transform_7(%arg0: i32) -> (i32, i32) {
    %c0_i32 = arith.constant 0 : i32
    %c0_i32_0 = arith.constant 0 : i32
    return %arg0, %c0_i32 : i32, i32
  }
}

</mosaic_0001>

<bundles_post_ra>
// kernel: q_network_forward.4
= control target key start
LH: loop header
LB: loop body
LE: loop exit
PB: predicated region body
PF: predicated region fallthrough
CT: control target
= control target key end

     0   :  { %vm255_vm0 = vcmask 1043456   ;;  %vm256_vm1 = vcmask 1044480   ;;  %vm188_vm2 = vcmask 203776   ;;  %v969_v1 = vmov 65535   ;;  %s1303_s1 = inlined_call_operand.vmem [shape: bf16[25,16], index: 1, kind: input, shape index: {}]   ;;  %s1304_s0 = inlined_call_operand.vmem [shape: bf16[338,25], index: 0, kind: input, shape index: {}]   ;;  %s1305_s2 = inlined_call_operand.vmem [shape: f32[1,16], index: 2, kind: input, shape index: {}]   ;;  %s1306_s3 = inlined_call_operand.vmem [shape: bf16[338,16], index: 3, kind: output, shape index: {}]  }
   0x1   :  { %v945_v0 = vld [vmem:[%s1303_s1] sm:$0xff]   ;;  %v257_v2 = vsel %vm255_vm0, 4294967295, %v969_v1  ;;  %v946_v3 = vld [vmem:[%s1303_s1 + $0x8] sm:$0x1f]   ;;  %v951_v10 = vld [vmem:[%s1304_s0 + $0x10] sm:$0xff]   ;;  %vm686_vm3 = vcmask 125952  }
   0x2   :  { %892 = vmatprep.subr.bf16.mxu0 %v945_v0  ;;  %v258_v4 = vsel %vm256_vm1, %v257_v2, 0  ;;  %940 = vmatprep.subr.bf16.mxu1 %v945_v0  ;;  %v947_v5 = vld [vmem:[%s1304_s0] sm:$0xff]   ;;  %v948_v8 = vld [vmem:[%s1304_s0 + $0x8] sm:$0xff]   ;;  %v953_v11 = vld [vmem:[%s1304_s0 + $0x70] sm:$0xff]   ;;  %vm729_vm4 = vcmask 122880  }
   0x3   :  { %893 = vmatpush3.bf16.msra.mxu0 %v945_v0  ;;  %v260_v6 = vand.u32 %v946_v3, %v258_v4  ;;  %942 = vmatpush3.bf16.msra.mxu1 %v945_v0  ;;  %v949_v7 = vld [vmem:[%s1304_s0 + $0x60] sm:$0xff]   ;;  %v950_v9 = vld [vmem:[%s1304_s0 + $0x68] sm:$0xff]   ;;  %v952_v12 = vld [vmem:[%s1304_s0 + $0x18] sm:$0xff]  }
   0x4   :  { %896 = vmatprep.mubr.msk.bf16.mxu0 %vm188_vm2, %v947_v5  ;;  %920 = vmatprep.mubr.msk.bf16.mxu1 %vm188_vm2, %v949_v7  ;;  %v954_v13 = vld [vmem:[%s1304_s0 + $0x78] sm:$0xff]   ;;  %v955_v14 = vld [vmem:[%s1304_s0 + $0x20] sm:$0xff]   ;;  %v956_v16 = vld [vmem:[%s1304_s0 + $0x28] sm:$0xff]  }
   0x5   :  { %894 = vmatprep.subr.bf16.mxu0 %v260_v6  ;;  %941 = vmatprep.subr.bf16.mxu1 %v260_v6  ;;  %v957_v15 = vld [vmem:[%s1304_s0 + $0x80] sm:$0xff]   ;;  %v958_v17 = vld [vmem:[%s1304_s0 + $0x88] sm:$0xff]   ;;  %v959_v18 = vld [vmem:[%s1304_s0 + $0x30] sm:$0xff]  }
   0x6   :  { %v961_v19 = vld [vmem:[%s1304_s0 + $0x90] sm:$0xff]   ;;  %v960_v20 = vld [vmem:[%s1304_s0 + $0x38] sm:$0xff]   ;;  %v963_v22 = vld [vmem:[%s1304_s0 + $0x40] sm:$0xff]  }
   0x7   :  { %895 = vmatpush3.bf16.msra.mxu0 %v260_v6  ;;  %943 = vmatpush3.bf16.msra.mxu1 %v260_v6  ;;  %v962_v21 = vld [vmem:[%s1304_s0 + $0x98] sm:$0xff]   ;;  %v965_v23 = vld [vmem:[%s1304_s0 + $0xa0] sm:$0xff]   ;;  %v964_v24 = vld [vmem:[%s1304_s0 + $0x48] sm:$0xff]  }
   0x8   :  { %v966_v25 = vld [vmem:[%s1304_s0 + $0xa8] ss:$0 sps:$4 sm:$0x11]   ;;  %v967_v26 = vld [vmem:[%s1304_s0 + $0x50] sm:$0xff]   ;;  %v968_v27 = vld [vmem:[%s1304_s0 + $0x58] sm:$0xff]  }
   0x9   :  { %v1087_v28 = vld [vmem:[%s1305_s2] ss:$0 sm:$0xff] }
   0xa   :  { %897 = vmatmul.mubr.msk.bf16.vlgmr.msra.gmra.mrb[0].mxu0 %vm188_vm2, %v948_v8  ;;  %921 = vmatmul.mubr.msk.bf16.vlgmr.msra.gmra.mrb[0].mxu1 %vm188_vm2, %v950_v9 }
   0xb   :  { %900 = vmatprep.mubr.msk.bf16.mxu0 %vm188_vm2, %v951_v10  ;;  %924 = vmatprep.mubr.msk.bf16.mxu1 %vm188_vm2, %v953_v11 }
  0x12   :  { %901 = vmatmul.mubr.msk.bf16.gmra.mrb[4].mxu0 %vm188_vm2, %v952_v12  ;;  %925 = vmatmul.mubr.msk.bf16.gmra.mrb[4].mxu1 %vm188_vm2, %v954_v13 }
  0x13   :  { %904 = vmatprep.mubr.msk.bf16.mxu0 %vm188_vm2, %v955_v14  ;;  %928 = vmatprep.mubr.msk.bf16.mxu1 %vm188_vm2, %v957_v15 }
  0x1a   :  { %905 = vmatmul.mubr.msk.bf16.gmra.mrb[8].mxu0 %vm188_vm2, %v956_v16  ;;  %929 = vmatmul.mubr.msk.bf16.gmra.mrb[8].mxu1 %vm188_vm2, %v958_v17 }
  0x1b   :  { %908 = vmatprep.mubr.msk.bf16.mxu0 %vm188_vm2, %v959_v18  ;;  %932 = vmatprep.mubr.msk.bf16.mxu1 %vm188_vm2, %v961_v19 }
  0x22   :  { %909 = vmatmul.mubr.msk.bf16.gmra.mrb[12].mxu0 %vm188_vm2, %v960_v20  ;;  %933 = vmatmul.mubr.msk.bf16.gmra.mrb[12].mxu1 %vm188_vm2, %v962_v21 }
  0x23   :  { %912 = vmatprep.mubr.msk.bf16.mxu0 %vm188_vm2, %v963_v22  ;;  %936 = vmatprep.mubr.msk.bf16.mxu1 %vm188_vm2, %v965_v23 }
  0x2a   :  { %913 = vmatmul.mubr.msk.bf16.gmra.mrb[16].mxu0 %vm188_vm2, %v964_v24  ;;  %937 = vmatmul.mubr.msk.bf16.gmra.mrb[16].mxu1 %vm188_vm2, %v966_v25 }
  0x2b   :  { %916 = vmatprep.mubr.msk.bf16.mxu0 %vm188_vm2, %v967_v26 }
  0x32   :  { %917 = vmatmul.mubr.msk.bf16.gmra.mrb[20].mxu0 %vm188_vm2, %v968_v27 }
  0xdd   :  { %v898_v29 = vpop.f32.mrb[0].mxu0  ;;  %v922_v30 = vpop.f32.mrb[0].mxu1 }
  0xde   :  { %v305_v31 = vadd.f32 %v898_v29, %v1087_v28  ;;  %v296_v32 = vpop.f32.mrb[1].mxu0  ;;  %v401_v33 = vadd.f32 %v922_v30, %v1087_v28  ;;  %v392_v34 = vpop.f32.mrb[1].mxu1 }
  0xdf   :  { %v297_v35 = vadd.f32 %v1087_v28, %v296_v32  ;;  %v899_v36 = vpop.f32.mrb[2].mxu0  ;;  %v393_v37 = vadd.f32 %v1087_v28, %v392_v34  ;;  %v923_v38 = vpop.f32.mrb[2].mxu1 }
  0xe0   :  { %v472_v39 = vmax.f32 %v305_v31, 0.0  ;;  %v308_v40 = vadd.f32 %v899_v36, %v1087_v28  ;;  %v299_v41 = vpop.f32.mrb[3].mxu0  ;;  %v496_v42 = vmax.f32 %v401_v33, 0.0  ;;  %v404_v43 = vadd.f32 %v923_v38, %v1087_v28  ;;  %v395_v44 = vpop.f32.mrb[3].mxu1 }
  0xe1   :  { %v470_v45 = vmax.f32 %v297_v35, 0.0  ;;  %v300_v46 = vadd.f32 %v1087_v28, %v299_v41  ;;  %v494_v47 = vmax.f32 %v393_v37, 0.0  ;;  %v396_v48 = vadd.f32 %v1087_v28, %v395_v44 }
  0xe2   :  { %v827_v49 = vpack.c.bf16 %v472_v39, %v472_v39  ;;  %v473_v50 = vmax.f32 %v308_v40, 0.0  ;;  %v851_v51 = vpack.c.bf16 %v496_v42, %v496_v42  ;;  %v497_v52 = vmax.f32 %v404_v43, 0.0 }
  0xe3   :  { %v825_v53 = vpack.c.bf16 %v470_v45, %v470_v45  ;;  %v471_v54 = vmax.f32 %v300_v46, 0.0  ;;  %v849_v55 = vpack.c.bf16 %v494_v47, %v494_v47  ;;  %v495_v56 = vmax.f32 %v396_v48, 0.0 }
  0xe4   :  { %689 = vst.msk [vmem:[%s1306_s3 + $0x8] sm:$0xf] %vm686_vm3, %v827_v49  ;;  %v828_v57 = vpack.c.bf16 %v473_v50, %v473_v50  ;;  %713 = vst.msk [vmem:[%s1306_s3 + $0x68] sm:$0xf] %vm686_vm3, %v851_v51  ;;  %v852_v58 = vpack.c.bf16 %v497_v52, %v497_v52 }
  0xe5   :  { %687 = vst.msk [vmem:[%s1306_s3] sm:$0xf] %vm686_vm3, %v825_v53  ;;  %v826_v59 = vpack.c.bf16 %v471_v54, %v471_v54  ;;  %711 = vst.msk [vmem:[%s1306_s3 + $0x60] sm:$0xf] %vm686_vm3, %v849_v55  ;;  %v902_v60 = vpop.f32.mrb[4].mxu0  ;;  %v850_v61 = vpack.c.bf16 %v495_v56, %v495_v56  ;;  %v926_v62 = vpop.f32.mrb[4].mxu1 }
  0xe6   :  { %690 = vst.msk [vmem:[%s1306_s3 + $0xc] sm:$0xf] %vm686_vm3, %v828_v57  ;;  %714 = vst.msk [vmem:[%s1306_s3 + $0x6c] sm:$0xf] %vm686_vm3, %v852_v58  ;;  %v321_v63 = vadd.f32 %v902_v60, %v1087_v28  ;;  %v312_v0 = vpop.f32.mrb[5].mxu0  ;;  %v417_v1 = vadd.f32 %v926_v62, %v1087_v28  ;;  %v408_v2 = vpop.f32.mrb[5].mxu1 }
  0xe7   :  { %688 = vst.msk [vmem:[%s1306_s3 + $0x4] sm:$0xf] %vm686_vm3, %v826_v59  ;;  %712 = vst.msk [vmem:[%s1306_s3 + $0x64] sm:$0xf] %vm686_vm3, %v850_v61  ;;  %v313_v3 = vadd.f32 %v1087_v28, %v312_v0  ;;  %v903_v4 = vpop.f32.mrb[6].mxu0  ;;  %v409_v5 = vadd.f32 %v1087_v28, %v408_v2  ;;  %v927_v6 = vpop.f32.mrb[6].mxu1 }
  0xe8   :  { %v476_v7 = vmax.f32 %v321_v63, 0.0  ;;  %v324_v8 = vadd.f32 %v903_v4, %v1087_v28  ;;  %v315_v9 = vpop.f32.mrb[7].mxu0  ;;  %v500_v10 = vmax.f32 %v417_v1, 0.0  ;;  %v420_v11 = vadd.f32 %v927_v6, %v1087_v28  ;;  %v411_v12 = vpop.f32.mrb[7].mxu1 }
  0xe9   :  { %v474_v13 = vmax.f32 %v313_v3, 0.0  ;;  %v316_v14 = vadd.f32 %v1087_v28, %v315_v9  ;;  %v498_v15 = vmax.f32 %v409_v5, 0.0  ;;  %v412_v16 = vadd.f32 %v1087_v28, %v411_v12 }
  0xea   :  { %v831_v17 = vpack.c.bf16 %v476_v7, %v476_v7  ;;  %v477_v18 = vmax.f32 %v324_v8, 0.0  ;;  %v855_v19 = vpack.c.bf16 %v500_v10, %v500_v10  ;;  %v501_v20 = vmax.f32 %v420_v11, 0.0 }
  0xeb   :  { %v829_v21 = vpack.c.bf16 %v474_v13, %v474_v13  ;;  %v475_v22 = vmax.f32 %v316_v14, 0.0  ;;  %v853_v23 = vpack.c.bf16 %v498_v15, %v498_v15  ;;  %v499_v24 = vmax.f32 %v412_v16, 0.0 }
  0xec   :  { %693 = vst.msk [vmem:[%s1306_s3 + $0x18] sm:$0xf] %vm686_vm3, %v831_v17  ;;  %v832_v25 = vpack.c.bf16 %v477_v18, %v477_v18  ;;  %717 = vst.msk [vmem:[%s1306_s3 + $0x78] sm:$0xf] %vm686_vm3, %v855_v19  ;;  %v856_v26 = vpack.c.bf16 %v501_v20, %v501_v20 }
  0xed   :  { %691 = vst.msk [vmem:[%s1306_s3 + $0x10] sm:$0xf] %vm686_vm3, %v829_v21  ;;  %v830_v27 = vpack.c.bf16 %v475_v22, %v475_v22  ;;  %715 = vst.msk [vmem:[%s1306_s3 + $0x70] sm:$0xf] %vm686_vm3, %v853_v23  ;;  %v906_v29 = vpop.f32.mrb[8].mxu0  ;;  %v854_v30 = vpack.c.bf16 %v499_v24, %v499_v24  ;;  %v930_v31 = vpop.f32.mrb[8].mxu1 }
  0xee   :  { %694 = vst.msk [vmem:[%s1306_s3 + $0x1c] sm:$0xf] %vm686_vm3, %v832_v25  ;;  %718 = vst.msk [vmem:[%s1306_s3 + $0x7c] sm:$0xf] %vm686_vm3, %v856_v26  ;;  %v337_v32 = vadd.f32 %v906_v29, %v1087_v28  ;;  %v328_v33 = vpop.f32.mrb[9].mxu0  ;;  %v433_v34 = vadd.f32 %v930_v31, %v1087_v28  ;;  %v424_v35 = vpop.f32.mrb[9].mxu1 }
  0xef   :  { %692 = vst.msk [vmem:[%s1306_s3 + $0x14] sm:$0xf] %vm686_vm3, %v830_v27  ;;  %716 = vst.msk [vmem:[%s1306_s3 + $0x74] sm:$0xf] %vm686_vm3, %v854_v30  ;;  %v329_v36 = vadd.f32 %v1087_v28, %v328_v33  ;;  %v907_v37 = vpop.f32.mrb[10].mxu0  ;;  %v425_v38 = vadd.f32 %v1087_v28, %v424_v35  ;;  %v931_v39 = vpop.f32.mrb[10].mxu1 }
  0xf0   :  { %v480_v40 = vmax.f32 %v337_v32, 0.0  ;;  %v340_v41 = vadd.f32 %v907_v37, %v1087_v28  ;;  %v331_v42 = vpop.f32.mrb[11].mxu0  ;;  %v504_v43 = vmax.f32 %v433_v34, 0.0  ;;  %v436_v44 = vadd.f32 %v931_v39, %v1087_v28  ;;  %v427_v45 = vpop.f32.mrb[11].mxu1 }
  0xf1   :  { %v478_v46 = vmax.f32 %v329_v36, 0.0  ;;  %v332_v47 = vadd.f32 %v1087_v28, %v331_v42  ;;  %v502_v48 = vmax.f32 %v425_v38, 0.0  ;;  %v428_v49 = vadd.f32 %v1087_v28, %v427_v45 }
  0xf2   :  { %v835_v50 = vpack.c.bf16 %v480_v40, %v480_v40  ;;  %v481_v51 = vmax.f32 %v340_v41, 0.0  ;;  %v859_v52 = vpack.c.bf16 %v504_v43, %v504_v43  ;;  %v505_v53 = vmax.f32 %v436_v44, 0.0 }
  0xf3   :  { %v833_v54 = vpack.c.bf16 %v478_v46, %v478_v46  ;;  %v479_v55 = vmax.f32 %v332_v47, 0.0  ;;  %v857_v56 = vpack.c.bf16 %v502_v48, %v502_v48  ;;  %v503_v57 = vmax.f32 %v428_v49, 0.0 }
  0xf4   :  { %697 = vst.msk [vmem:[%s1306_s3 + $0x28] sm:$0xf] %vm686_vm3, %v835_v50  ;;  %v836_v58 = vpack.c.bf16 %v481_v51, %v481_v51  ;;  %721 = vst.msk [vmem:[%s1306_s3 + $0x88] sm:$0xf] %vm686_vm3, %v859_v52  ;;  %v860_v59 = vpack.c.bf16 %v505_v53, %v505_v53 }
  0xf5   :  { %695 = vst.msk [vmem:[%s1306_s3 + $0x20] sm:$0xf] %vm686_vm3, %v833_v54  ;;  %v834_v60 = vpack.c.bf16 %v479_v55, %v479_v55  ;;  %719 = vst.msk [vmem:[%s1306_s3 + $0x80] sm:$0xf] %vm686_vm3, %v857_v56  ;;  %v910_v61 = vpop.f32.mrb[12].mxu0  ;;  %v858_v62 = vpack.c.bf16 %v503_v57, %v503_v57  ;;  %v934_v63 = vpop.f32.mrb[12].mxu1 }
  0xf6   :  { %698 = vst.msk [vmem:[%s1306_s3 + $0x2c] sm:$0xf] %vm686_vm3, %v836_v58  ;;  %722 = vst.msk [vmem:[%s1306_s3 + $0x8c] sm:$0xf] %vm686_vm3, %v860_v59  ;;  %v353_v0 = vadd.f32 %v910_v61, %v1087_v28  ;;  %v344_v1 = vpop.f32.mrb[13].mxu0  ;;  %v449_v2 = vadd.f32 %v934_v63, %v1087_v28  ;;  %v440_v3 = vpop.f32.mrb[13].mxu1 }
  0xf7   :  { %696 = vst.msk [vmem:[%s1306_s3 + $0x24] sm:$0xf] %vm686_vm3, %v834_v60  ;;  %720 = vst.msk [vmem:[%s1306_s3 + $0x84] sm:$0xf] %vm686_vm3, %v858_v62  ;;  %v345_v4 = vadd.f32 %v1087_v28, %v344_v1  ;;  %v911_v5 = vpop.f32.mrb[14].mxu0  ;;  %v441_v6 = vadd.f32 %v1087_v28, %v440_v3  ;;  %v935_v7 = vpop.f32.mrb[14].mxu1 }
  0xf8   :  { %v484_v8 = vmax.f32 %v353_v0, 0.0  ;;  %v356_v9 = vadd.f32 %v911_v5, %v1087_v28  ;;  %v347_v10 = vpop.f32.mrb[15].mxu0  ;;  %v508_v11 = vmax.f32 %v449_v2, 0.0  ;;  %v452_v12 = vadd.f32 %v935_v7, %v1087_v28  ;;  %v443_v13 = vpop.f32.mrb[15].mxu1 }
  0xf9   :  { %v482_v14 = vmax.f32 %v345_v4, 0.0  ;;  %v348_v15 = vadd.f32 %v1087_v28, %v347_v10  ;;  %v506_v16 = vmax.f32 %v441_v6, 0.0  ;;  %v444_v17 = vadd.f32 %v1087_v28, %v443_v13 }
  0xfa   :  { %v839_v18 = vpack.c.bf16 %v484_v8, %v484_v8  ;;  %v485_v19 = vmax.f32 %v356_v9, 0.0  ;;  %v863_v20 = vpack.c.bf16 %v508_v11, %v508_v11  ;;  %v509_v21 = vmax.f32 %v452_v12, 0.0 }
  0xfb   :  { %v837_v22 = vpack.c.bf16 %v482_v14, %v482_v14  ;;  %v483_v23 = vmax.f32 %v348_v15, 0.0  ;;  %v861_v24 = vpack.c.bf16 %v506_v16, %v506_v16  ;;  %v507_v25 = vmax.f32 %v444_v17, 0.0 }
  0xfc   :  { %701 = vst.msk [vmem:[%s1306_s3 + $0x38] sm:$0xf] %vm686_vm3, %v839_v18  ;;  %v840_v26 = vpack.c.bf16 %v485_v19, %v485_v19  ;;  %725 = vst.msk [vmem:[%s1306_s3 + $0x98] sm:$0xf] %vm686_vm3, %v863_v20  ;;  %v864_v27 = vpack.c.bf16 %v509_v21, %v509_v21 }
  0xfd   :  { %699 = vst.msk [vmem:[%s1306_s3 + $0x30] sm:$0xf] %vm686_vm3, %v837_v22  ;;  %v838_v29 = vpack.c.bf16 %v483_v23, %v483_v23  ;;  %723 = vst.msk [vmem:[%s1306_s3 + $0x90] sm:$0xf] %vm686_vm3, %v861_v24  ;;  %v914_v30 = vpop.f32.mrb[16].mxu0  ;;  %v862_v31 = vpack.c.bf16 %v507_v25, %v507_v25  ;;  %v938_v32 = vpop.f32.mrb[16].mxu1 }
  0xfe   :  { %702 = vst.msk [vmem:[%s1306_s3 + $0x3c] sm:$0xf] %vm686_vm3, %v840_v26  ;;  %726 = vst.msk [vmem:[%s1306_s3 + $0x9c] sm:$0xf] %vm686_vm3, %v864_v27  ;;  %v369_v33 = vadd.f32 %v914_v30, %v1087_v28  ;;  %v360_v34 = vpop.f32.mrb[17].mxu0  ;;  %v465_v35 = vadd.f32 %v938_v32, %v1087_v28  ;;  %v456_v36 = vpop.f32.mrb[17].mxu1 }
  0xff   :  { %700 = vst.msk [vmem:[%s1306_s3 + $0x34] sm:$0xf] %vm686_vm3, %v838_v29  ;;  %724 = vst.msk [vmem:[%s1306_s3 + $0x94] sm:$0xf] %vm686_vm3, %v862_v31  ;;  %v361_v37 = vadd.f32 %v1087_v28, %v360_v34  ;;  %v915_v38 = vpop.f32.mrb[18].mxu0  ;;  %v457_v39 = vadd.f32 %v1087_v28, %v456_v36  ;;  %v939_v40 = vpop.f32.mrb[18].mxu1 }
 0x100   :  { %v488_v41 = vmax.f32 %v369_v33, 0.0  ;;  %v372_v42 = vadd.f32 %v915_v38, %v1087_v28  ;;  %v363_v43 = vpop.f32.mrb[19].mxu0  ;;  %v512_v44 = vmax.f32 %v465_v35, 0.0  ;;  %v459_v45 = vpop.f32.mrb[19].mxu1 }
 0x101   :  { %v486_v46 = vmax.f32 %v361_v37, 0.0  ;;  %v364_v47 = vadd.f32 %v1087_v28, %v363_v43  ;;  %v510_v48 = vmax.f32 %v457_v39, 0.0  ;;  %v460_v49 = vadd.f32 %v1087_v28, %v459_v45 }
 0x102   :  { %v843_v50 = vpack.c.bf16 %v488_v41, %v488_v41  ;;  %v489_v51 = vmax.f32 %v372_v42, 0.0  ;;  %v867_v52 = vpack.c.bf16 %v512_v44, %v512_v44 }
 0x103   :  { %v841_v53 = vpack.c.bf16 %v486_v46, %v486_v46  ;;  %v487_v54 = vmax.f32 %v364_v47, 0.0  ;;  %v865_v55 = vpack.c.bf16 %v510_v48, %v510_v48  ;;  %v511_v56 = vmax.f32 %v460_v49, 0.0 }
 0x104   :  { %705 = vst.msk [vmem:[%s1306_s3 + $0x48] sm:$0xf] %vm686_vm3, %v843_v50  ;;  %v844_v57 = vpack.c.bf16 %v489_v51, %v489_v51 }
 0x105   :  { %730 = vst.msk [vmem:[%s1306_s3 + $0xa8] sm:$0x1] %vm729_vm4, %v867_v52  ;;  %v842_v58 = vpack.c.bf16 %v487_v54, %v487_v54  ;;  %v918_v59 = vpop.f32.mrb[20].mxu0  ;;  %v866_v60 = vpack.c.bf16 %v511_v56, %v511_v56 }
 0x106   :  { %703 = vst.msk [vmem:[%s1306_s3 + $0x40] sm:$0xf] %vm686_vm3, %v841_v53  ;;  %727 = vst.msk [vmem:[%s1306_s3 + $0xa0] sm:$0xf] %vm686_vm3, %v865_v55  ;;  %v385_v61 = vadd.f32 %v918_v59, %v1087_v28  ;;  %v376_v62 = vpop.f32.mrb[21].mxu0 }
 0x107   :  { %706 = vst.msk [vmem:[%s1306_s3 + $0x4c] sm:$0xf] %vm686_vm3, %v844_v57  ;;  %704 = vst.msk [vmem:[%s1306_s3 + $0x44] sm:$0xf] %vm686_vm3, %v842_v58  ;;  %v377_v63 = vadd.f32 %v1087_v28, %v376_v62  ;;  %v919_v0 = vpop.f32.mrb[22].mxu0 }
 0x108   :  { %728 = vst.msk [vmem:[%s1306_s3 + $0xa4] sm:$0xf] %vm686_vm3, %v866_v60  ;;  %v492_v1 = vmax.f32 %v385_v61, 0.0  ;;  %v388_v2 = vadd.f32 %v919_v0, %v1087_v28  ;;  %v379_v3 = vpop.f32.mrb[23].mxu0 }
 0x109   :  { %v490_v4 = vmax.f32 %v377_v63, 0.0  ;;  %v380_v5 = vadd.f32 %v1087_v28, %v379_v3 }
 0x10a   :  { %v847_v6 = vpack.c.bf16 %v492_v1, %v492_v1  ;;  %v493_v7 = vmax.f32 %v388_v2, 0.0 }
 0x10b   :  { %v845_v8 = vpack.c.bf16 %v490_v4, %v490_v4  ;;  %v491_v9 = vmax.f32 %v380_v5, 0.0 }
 0x10c   :  { %709 = vst.msk [vmem:[%s1306_s3 + $0x58] sm:$0xf] %vm686_vm3, %v847_v6  ;;  %v848_v10 = vpack.c.bf16 %v493_v7, %v493_v7 }
 0x10d   :  { %707 = vst.msk [vmem:[%s1306_s3 + $0x50] sm:$0xf] %vm686_vm3, %v845_v8  ;;  %v846_v11 = vpack.c.bf16 %v491_v9, %v491_v9 }
 0x10e   :  { %710 = vst.msk [vmem:[%s1306_s3 + $0x5c] sm:$0xf] %vm686_vm3, %v848_v10 }
 0x10f   :  { %708 = vst.msk [vmem:[%s1306_s3 + $0x54] sm:$0xf] %vm686_vm3, %v846_v11 }

// kernel: q_network_forward.5
= control target key start
LH: loop header
LB: loop body
LE: loop exit
PB: predicated region body
PF: predicated region fallthrough
CT: control target
= control target key end

     0   :  { %v378_v0 = vmov 0   ;;  %vm145_vm0 = vcmask 130048   ;;  %vm279_vm1 = vcmask 257024   ;;  %s497_s1 = inlined_call_operand.vmem [shape: bf16[144,32], index: 1, kind: input, shape index: {}]   ;;  %s498_s0 = inlined_call_operand.vmem [shape: bf16[72,144], index: 0, kind: input, shape index: {}]   ;;  %s499_s2 = inlined_call_operand.vmem [shape: f32[1,32], index: 2, kind: input, shape index: {}]   ;;  %s500_s3 = inlined_call_operand.vmem [shape: bf16[72,32], index: 3, kind: output, shape index: {}]  }
   0x1   :  { %161 = vmatprep.subr.bf16.mxu0 %v378_v0  ;;  %v355_v1 = vld [vmem:[%s497_s1] sm:$0xff]   ;;  %336 = vmatprep.subr.bf16.mxu1 %v378_v0  ;;  %v356_v2 = vld [vmem:[%s497_s1 + $0x8] sm:$0xff]   ;;  %v357_v3 = vld [vmem:[%s497_s1 + $0x10] sm:$0xff]  }
   0x2   :  { %162 = vmatpush1.bf16.msra.mxu0 %v355_v1  ;;  %345 = vmatpush1.bf16.msra.mxu1 %v355_v1  ;;  %v358_v4 = vld [vmem:[%s497_s1 + $0x18] sm:$0xff]   ;;  %v366_v5 = vld [vmem:[%s498_s0 + $0x4] ss:$8 sps:$4 sm:$0xff]   ;;  %v361_v9 = vld [vmem:[%s497_s1 + $0x30] sm:$0xff]  }
   0x3   :  { %163 = vmatprep.subr.bf16.mxu0 %v378_v0  ;;  %337 = vmatprep.subr.bf16.mxu1 %v378_v0  ;;  %v369_v6 = vld [vmem:[%s498_s0 + $0x34] ss:$8 sps:$4 sm:$0xff]   ;;  %v359_v7 = vld [vmem:[%s497_s1 + $0x20] sm:$0xff]   ;;  %v360_v8 = vld [vmem:[%s497_s1 + $0x28] sm:$0xff]  }
   0x4   :  { %313 = vmatprep.mubr.msk.bf16.mxu0 %vm145_vm0, %v366_v5  ;;  %316 = vmatprep.mubr.msk.bf16.mxu1 %vm145_vm0, %v369_v6  ;;  %v362_v10 = vld [vmem:[%s497_s1 + $0x38] sm:$0xff]   ;;  %v363_v11 = vld [vmem:[%s497_s1 + $0x40] sm:$0xff]  }
   0x5   :  { %v23_v12 = vld [vmem:[%s498_s0 + $0x40] sm:$0xff]  ;;  %v367_v14 = vld [vmem:[%s498_s0 + $0x30] ss:$8 sps:$4 sm:$0xff]   ;;  %v370_v15 = vld [vmem:[%s498_s0 + $0x14] ss:$8 sps:$4 sm:$0xff]  }
   0x6   :  { %164 = vmatpush1.bf16.msra.mxu0 %v356_v2  ;;  %346 = vmatpush1.bf16.msra.mxu1 %v356_v2  ;;  %v364_v13 = vld [vmem:[%s498_s0] ss:$8 sps:$4 sm:$0xff]   ;;  %v303_v16 = vcombine.high %v23_v12, %v23_v12  ;;  %v372_v17 = vld [vmem:[%s498_s0 + $0x10] ss:$8 sps:$4 sm:$0xff]   ;;  %v302_v18 = vcombine.low %v23_v12, %v23_v12  ;;  %v374_v19 = vld [vmem:[%s498_s0 + $0x24] ss:$8 sps:$4 sm:$0xff]  }
   0x7   :  { %165 = vmatprep.subr.bf16.mxu0 %v378_v0  ;;  %338 = vmatprep.subr.bf16.mxu1 %v378_v0  ;;  %v377_v20 = vld [vmem:[%s498_s0 + $0x20] ss:$8 sps:$4 sm:$0xff]  }
   0x8   :  { %v293_v21 = vld [vmem:[%s499_s2] ss:$0 sm:$0xff] }
   0xa   :  { %166 = vmatpush1.bf16.msra.mxu0 %v357_v3  ;;  %347 = vmatpush1.bf16.msra.mxu1 %v357_v3 }
   0xb   :  { %167 = vmatprep.subr.bf16.mxu0 %v378_v0  ;;  %339 = vmatprep.subr.bf16.mxu1 %v378_v0 }
   0xe   :  { %168 = vmatpush1.bf16.msra.mxu0 %v358_v4  ;;  %348 = vmatpush1.bf16.msra.mxu1 %v358_v4 }
   0xf   :  { %169 = vmatprep.subr.bf16.mxu0 %v378_v0  ;;  %340 = vmatprep.subr.bf16.mxu1 %v378_v0 }
  0x12   :  { %170 = vmatpush1.bf16.msra.mxu0 %v359_v7  ;;  %349 = vmatpush1.bf16.msra.mxu1 %v359_v7 }
  0x13   :  { %171 = vmatprep.subr.bf16.mxu0 %v378_v0  ;;  %341 = vmatprep.subr.bf16.mxu1 %v378_v0 }
  0x16   :  { %172 = vmatpush1.bf16.msra.mxu0 %v360_v8  ;;  %350 = vmatpush1.bf16.msra.mxu1 %v360_v8 }
  0x17   :  { %173 = vmatprep.subr.bf16.mxu0 %v378_v0  ;;  %342 = vmatprep.subr.bf16.mxu1 %v378_v0 }
  0x1a   :  { %174 = vmatpush1.bf16.msra.mxu0 %v361_v9  ;;  %351 = vmatpush1.bf16.msra.mxu1 %v361_v9 }
  0x1b   :  { %175 = vmatprep.subr.bf16.mxu0 %v378_v0  ;;  %343 = vmatprep.subr.bf16.mxu1 %v378_v0 }
  0x1e   :  { %176 = vmatpush1.bf16.msra.mxu0 %v362_v10  ;;  %352 = vmatpush1.bf16.msra.mxu1 %v362_v10 }
  0x1f   :  { %177 = vmatprep.subr.bf16.mxu0 %v378_v0  ;;  %344 = vmatprep.subr.bf16.mxu1 %v378_v0 }
  0x22   :  { %178 = vmatpush1.bf16.msra.mxu0 %v363_v11  ;;  %353 = vmatpush1.bf16.msra.mxu1 %v363_v11 }
  0x25   :  { %194 = vmatmul.mubr.bf16.vlgmr.msra.gmra.mrb[0].mxu0 %v364_v13  ;;  %218 = vmatmul.mubr.bf16.vlgmr.msra.gmra.mrb[0].mxu1 %v367_v14 }
  0x26   :  { %314 = vmatprep.mubr.msk.bf16.mxu0 %vm145_vm0, %v370_v15  ;;  %317 = vmatprep.mubr.msk.bf16.mxu1 %vm145_vm0, %v303_v16 }
  0x2d   :  { %202 = vmatmul.mubr.bf16.gmra.mrb[4].mxu0 %v372_v17  ;;  %226 = vmatmul.mubr.bf16.gmra.mrb[4].mxu1 %v302_v18 }
  0x2e   :  { %315 = vmatprep.mubr.msk.bf16.mxu0 %vm145_vm0, %v374_v19 }
  0x35   :  { %210 = vmatmul.mubr.bf16.gmra.mrb[8].mxu0 %v377_v20 }
  0xf8   :  { %v195_v22 = vpop.f32.mrb[0].mxu0  ;;  %v219_v23 = vpop.f32.mrb[0].mxu1 }
  0xf9   :  { %v196_v24 = vadd.f32 %v293_v21, %v195_v22  ;;  %v197_v25 = vpop.f32.mrb[1].mxu0  ;;  %v220_v26 = vadd.f32 %v293_v21, %v219_v23  ;;  %v221_v27 = vpop.f32.mrb[1].mxu1 }
  0xfa   :  { %v198_v28 = vpop.f32.mrb[2].mxu0  ;;  %v222_v29 = vpop.f32.mrb[2].mxu1 }
  0xfb   :  { %v233_v30 = vmax.f32 %v196_v24, 0.0  ;;  %v199_v31 = vadd.f32 %v293_v21, %v198_v28  ;;  %v200_v32 = vpop.f32.mrb[3].mxu0  ;;  %v239_v33 = vmax.f32 %v220_v26, 0.0  ;;  %v223_v34 = vadd.f32 %v293_v21, %v222_v29  ;;  %v224_v35 = vpop.f32.mrb[3].mxu1 }
  0xfd   :  { %v327_v36 = vpack.c.bf16 %v233_v30, %v233_v30  ;;  %v234_v37 = vmax.f32 %v199_v31, 0.0  ;;  %v333_v38 = vpack.c.bf16 %v239_v33, %v239_v33  ;;  %v240_v39 = vmax.f32 %v223_v34, 0.0 }
  0xff   :  { %280 = vst.msk [vmem:[%s500_s3] sm:$0xf] %vm279_vm1, %v327_v36  ;;  %v328_v40 = vpack.c.bf16 %v234_v37, %v234_v37  ;;  %286 = vst.msk [vmem:[%s500_s3 + $0x18] sm:$0xf] %vm279_vm1, %v333_v38  ;;  %v334_v41 = vpack.c.bf16 %v240_v39, %v240_v39 }
 0x100   :  { %v203_v42 = vpop.f32.mrb[4].mxu0  ;;  %v227_v43 = vpop.f32.mrb[4].mxu1 }
 0x101   :  { %281 = vst.msk [vmem:[%s500_s3 + $0x4] sm:$0xf] %vm279_vm1, %v328_v40  ;;  %v204_v44 = vadd.f32 %v293_v21, %v203_v42  ;;  %v205_v45 = vpop.f32.mrb[5].mxu0  ;;  %287 = vst.msk [vmem:[%s500_s3 + $0x1c] sm:$0xf] %vm279_vm1, %v334_v41  ;;  %v228_v46 = vadd.f32 %v293_v21, %v227_v43  ;;  %v229_v47 = vpop.f32.mrb[5].mxu1 }
 0x102   :  { %v206_v48 = vpop.f32.mrb[6].mxu0  ;;  %v230_v49 = vpop.f32.mrb[6].mxu1 }
 0x103   :  { %v235_v50 = vmax.f32 %v204_v44, 0.0  ;;  %v207_v51 = vadd.f32 %v293_v21, %v206_v48  ;;  %v208_v52 = vpop.f32.mrb[7].mxu0  ;;  %v241_v53 = vmax.f32 %v228_v46, 0.0  ;;  %v231_v54 = vpop.f32.mrb[7].mxu1 }
 0x105   :  { %v329_v55 = vpack.c.bf16 %v235_v50, %v235_v50  ;;  %v236_v56 = vmax.f32 %v207_v51, 0.0  ;;  %v335_v57 = vpack.c.bf16 %v241_v53, %v241_v53 }
 0x107   :  { %282 = vst.msk [vmem:[%s500_s3 + $0x8] sm:$0xf] %vm279_vm1, %v329_v55  ;;  %v330_v58 = vpack.c.bf16 %v236_v56, %v236_v56  ;;  %288 = vst.msk [vmem:[%s500_s3 + $0x20] sm:$0xf] %vm279_vm1, %v335_v57 }
 0x108   :  { %v211_v59 = vpop.f32.mrb[8].mxu0 }
 0x109   :  { %283 = vst.msk [vmem:[%s500_s3 + $0xc] sm:$0xf] %vm279_vm1, %v330_v58  ;;  %v212_v60 = vadd.f32 %v293_v21, %v211_v59  ;;  %v213_v61 = vpop.f32.mrb[9].mxu0 }
 0x10a   :  { %v214_v62 = vpop.f32.mrb[10].mxu0 }
 0x10b   :  { %v237_v63 = vmax.f32 %v212_v60, 0.0  ;;  %v215_v0 = vadd.f32 %v293_v21, %v214_v62  ;;  %v216_v1 = vpop.f32.mrb[11].mxu0 }
 0x10d   :  { %v331_v2 = vpack.c.bf16 %v237_v63, %v237_v63  ;;  %v238_v3 = vmax.f32 %v215_v0, 0.0 }
 0x10f   :  { %284 = vst.msk [vmem:[%s500_s3 + $0x10] sm:$0xf] %vm279_vm1, %v331_v2  ;;  %v332_v4 = vpack.c.bf16 %v238_v3, %v238_v3 }
 0x111   :  { %285 = vst.msk [vmem:[%s500_s3 + $0x14] sm:$0xf] %vm279_vm1, %v332_v4 }

// kernel: q_network_forward.6
= control target key start
LH: loop header
LB: loop body
LE: loop exit
PB: predicated region body
PF: predicated region fallthrough
CT: control target
= control target key end

     0   :  { %v349_v1 = vmov 0.0   ;;  %vm350_vm0 = vmmov 0   ;;  %vm178_vm1 = vcmask 261120   ;;  %vm264_vm2 = vcmask 519168   ;;  %s437_s1 = inlined_call_operand.vmem [shape: bf16[288,64], index: 1, kind: input, shape index: {}]   ;;  %s438_s0 = inlined_call_operand.vmem [shape: bf16[8,288], index: 0, kind: input, shape index: {}]   ;;  %s439_s2 = inlined_call_operand.vmem [shape: f32[1,64], index: 2, kind: input, shape index: {}]   ;;  %s440_s3 = inlined_call_operand.vmem [shape: bf16[8,64], index: 3, kind: output, shape index: {}]  }
   0x1   :  { %v328_v0 = vld [vmem:[%s437_s1 + $0x40] sm:$0xff]   ;;  %318 = vmatprep.subr.bf16.mxu1 %v349_v1  ;;  %322 = vmatprep.mubr.msk.bf16.mxu1 %vm350_vm0, %v349_v1  ;;  %v330_v3 = vld [vmem:[%s437_s1 + $0x48] sm:$0xff]   ;;  %v332_v5 = vld [vmem:[%s437_s1 + $0x50] sm:$0xff]  }
   0x2   :  { %v329_v2 = vld [vmem:[%s437_s1] sm:$0xff]   ;;  %293 = vmatprep.subr.bf16.mxu0 %v328_v0  ;;  %v331_v4 = vld [vmem:[%s437_s1 + $0x8] sm:$0xff]   ;;  %v333_v6 = vld [vmem:[%s437_s1 + $0x10] sm:$0xff]  }
   0x3   :  { %294 = vmatpush3.bf16.msra.mxu0 %v329_v2  ;;  %v334_v7 = vld [vmem:[%s437_s1 + $0x58] sm:$0xff]   ;;  %v336_v9 = vld [vmem:[%s437_s1 + $0x60] sm:$0xff]   ;;  %v338_v12 = vld [vmem:[%s437_s1 + $0x68] sm:$0xff]  }
   0x4   :  { %295 = vmatprep.subr.bf16.mxu0 %v330_v3  ;;  %v335_v8 = vld [vmem:[%s437_s1 + $0x18] sm:$0xff]   ;;  %v342_v10 = vld [vmem:[%s437_s1 + $0x80] sm:$0xff]   ;;  %v348_v15 = vld [vmem:[%s437_s1 + $0x88] sm:$0xff]  }
   0x5   :  { %v337_v11 = vld [vmem:[%s437_s1 + $0x20] sm:$0xff]   ;;  %319 = vmatpush3.bf16.msra.mxu1 %v342_v10  ;;  %v339_v16 = vld [vmem:[%s437_s1 + $0x28] sm:$0xff]   ;;  %v340_v17 = vld [vmem:[%s437_s1 + $0x70] sm:$0xff]  }
   0x6   :  { %320 = vmatprep.subr.bf16.mxu1 %v349_v1  ;;  %v15_v13 = vld [vmem:[%s438_s0] sm:$0xff]  ;;  %v347_v18 = vld [vmem:[%s438_s0 + $0x8] ss:$0 sps:$4 sm:$0xff]   ;;  %v341_v19 = vld [vmem:[%s437_s1 + $0x30] sm:$0xff]  }
   0x7   :  { %296 = vmatpush3.bf16.msra.mxu0 %v331_v4  ;;  %v272_v14 = vcombine.high %v15_v13, %v15_v13  ;;  %v343_v20 = vld [vmem:[%s437_s1 + $0x78] sm:$0xff]   ;;  %v271_v22 = vcombine.low %v15_v13, %v15_v13  ;;  %v270_v29 = vld [vmem:[%s439_s2] ss:$0 sm:$0xff] }
   0x8   :  { %297 = vmatprep.subr.bf16.mxu0 %v332_v5  ;;  %v344_v21 = vld [vmem:[%s437_s1 + $0x38] sm:$0xff]  }
   0x9   :  { %214 = vmatprep.mubr.bf16.mxu0 %v272_v14  ;;  %321 = vmatpush3.bf16.msra.mxu1 %v348_v15 }
   0xb   :  { %298 = vmatpush3.bf16.msra.mxu0 %v333_v6 }
   0xc   :  { %299 = vmatprep.subr.bf16.mxu0 %v334_v7  ;;  %323 = vmatmul.mubr.msk.bf16.vlgmr.msra.gmra.mrb[0].mxu1 %vm178_vm1, %v347_v18 }
   0xf   :  { %300 = vmatpush3.bf16.msra.mxu0 %v335_v8 }
  0x10   :  { %301 = vmatprep.subr.bf16.mxu0 %v336_v9 }
  0x13   :  { %302 = vmatpush3.bf16.msra.mxu0 %v337_v11 }
  0x14   :  { %303 = vmatprep.subr.bf16.mxu0 %v338_v12 }
  0x17   :  { %304 = vmatpush3.bf16.msra.mxu0 %v339_v16 }
  0x18   :  { %305 = vmatprep.subr.bf16.mxu0 %v340_v17 }
  0x1b   :  { %306 = vmatpush3.bf16.msra.mxu0 %v341_v19 }
  0x1c   :  { %307 = vmatprep.subr.bf16.mxu0 %v343_v20 }
  0x1f   :  { %308 = vmatpush3.bf16.msra.mxu0 %v344_v21 }
  0x22   :  { %215 = vmatmul.mubr.bf16.vlgmr.msra.gmra.mrb[0].mxu0 %v271_v22 }
  0xdf   :  { %v256_v23 = vpop.f32.mrb[0].mxu1 }
  0xe0   :  { %v324_v24 = vpop.f32.mrb[1].mxu1 }
  0xe1   :  { %v259_v25 = vpop.f32.mrb[2].mxu1 }
  0xe2   :  { %v325_v26 = vpop.f32.mrb[3].mxu1 }
  0xf5   :  { %v309_v27 = vpop.f32.mrb[0].mxu0 }
  0xf6   :  { %v310_v28 = vpop.f32.mrb[1].mxu0 }
  0xf7   :  { %v311_v30 = vadd.f32 %v310_v28, %v309_v27  ;;  %v312_v31 = vpop.f32.mrb[2].mxu0 }
  0xf8   :  { %v313_v32 = vpop.f32.mrb[3].mxu0 }
  0xf9   :  { %v217_v33 = vadd.f32 %v311_v30, %v270_v29 }
  0xfb   :  { %v257_v34 = vadd.f32 %v256_v23, %v217_v33 }
  0xfd   :  { %v262_v35 = vmax.f32 %v257_v34, 0.0 }
  0xff   :  { %v263_v36 = vpack.c.bf16 %v262_v35, %v262_v35 }
 0x101   :  { %265 = vst.msk [vmem:[%s440_s3] sm:$0xf] %vm264_vm2, %v263_v36 }

// kernel: q_network_forward.7
= control target key start
LH: loop header
LB: loop body
LE: loop exit
PB: predicated region body
PF: predicated region fallthrough
CT: control target
= control target key end

     0   :  { %v63_v9 = vlaneseq  ;;  %v817_v10 = vmov 1966171168   ;;  %s1067_s0 = inlined_call_operand.vmem [shape: bf16[2,256], index: 0, kind: input, shape index: {}]   ;;  %s1068_s1 = inlined_call_operand.vmem [shape: bf16[256,256], index: 1, kind: input, shape index: {}]   ;;  %s1069_s2 = inlined_call_operand.vmem [shape: f32[1,256], index: 2, kind: input, shape index: {}]   ;;  %s1070_s3 = inlined_call_operand.vmem [shape: bf16[256,128], index: 3, kind: input, shape index: {}]   ;;  %s1071_s4 = inlined_call_operand.vmem [shape: f32[1,128], index: 4, kind: input, shape index: {}]   ;;  %s1072_s5 = inlined_call_operand.vmem [shape: bf16[128,4], index: 5, kind: input, shape index: {}]   ;;  %s1073_s6 = inlined_call_operand.vmem [shape: f32[1,4], index: 6, kind: input, shape index: {}]   ;;  %s1074_s7 = inlined_call_operand.hbm [shape: f32[2,4], index: 7, kind: output, shape index: {}]  }
   0x1   :  { %v721_v0 = vld [vmem:[%s1068_s1 + $0x4] ss:$8 sps:$4 sm:$0xff]   ;;  %v723_v1 = vld [vmem:[%s1068_s1] ss:$8 sps:$4 sm:$0xff]   ;;  %v724_v2 = vld [vmem:[%s1068_s1 + $0x14] ss:$8 sps:$4 sm:$0xff]   ;;  %v83_v11 = vunpack.c.l.s4 %v817_v10 }
   0x2   :  { %258 = vmatprep.subr.bf16.mxu0 %v721_v0  ;;  %v726_v3 = vld [vmem:[%s1068_s1 + $0x10] ss:$8 sps:$4 sm:$0xff]   ;;  %v727_v4 = vld [vmem:[%s1068_s1 + $0x24] ss:$8 sps:$4 sm:$0xff]   ;;  %v729_v5 = vld [vmem:[%s1068_s1 + $0x20] ss:$8 sps:$4 sm:$0xff]  }
   0x3   :  { %259 = vmatpush1.bf16.msra.mxu0 %v723_v1  ;;  %v730_v6 = vld [vmem:[%s1068_s1 + $0x34] ss:$8 sps:$4 sm:$0xff]   ;;  %v732_v7 = vld [vmem:[%s1068_s1 + $0x30] ss:$8 sps:$4 sm:$0xff]   ;;  %v733_v8 = vld [vmem:[%s1068_s1 + $0x44] ss:$8 sps:$4 sm:$0xff]   ;;  %v84_v15 = vunpack.c.0.s8 %v83_v11 }
   0x4   :  { %260 = vmatprep.subr.bf16.mxu0 %v724_v2  ;;  %v735_v12 = vld [vmem:[%s1068_s1 + $0x40] ss:$8 sps:$4 sm:$0xff]   ;;  %v736_v13 = vld [vmem:[%s1068_s1 + $0x54] ss:$8 sps:$4 sm:$0xff]   ;;  %v894_v14 = vshrl.u32 %v63_v9, 7 }
   0x5   :  { %v738_v16 = vld [vmem:[%s1068_s1 + $0x50] ss:$8 sps:$4 sm:$0xff]   ;;  %v739_v17 = vld [vmem:[%s1068_s1 + $0x64] ss:$8 sps:$4 sm:$0xff]   ;;  %v741_v19 = vld [vmem:[%s1068_s1 + $0x60] ss:$8 sps:$4 sm:$0xff]  }
   0x6   :  { %v903_v18 = vsub.s32 %v84_v15, %v894_v14  ;;  %v911_v20 = vld.sshfl [vmem:[%s1067_s0] sm:$0x11 pattern:$0x75316420]  ;;  %v742_v21 = vld [vmem:[%s1068_s1 + $0x74] ss:$8 sps:$4 sm:$0xff]  }
   0x7   :  { %261 = vmatpush1.bf16.msra.mxu0 %v726_v3  ;;  %v81_v22 = vcombine.high %v911_v20, %v911_v20  ;;  %v769_v23 = vld [vmem:[%s1070_s3 + $0x40] sm:$0xff]   ;;  %v771_v26 = vld [vmem:[%s1070_s3 + $0x48] sm:$0xff]   ;;  %v773_v28 = vld [vmem:[%s1070_s3 + $0x50] sm:$0xff]  }
   0x8   :  { %262 = vmatprep.subr.bf16.mxu0 %v727_v4  ;;  %v770_v24 = vld [vmem:[%s1070_s3] sm:$0xff]   ;;  %666 = vmatprep.subr.bf16.mxu1 %v769_v23  ;;  %v772_v27 = vld [vmem:[%s1070_s3 + $0x8] sm:$0xff]   ;;  %v744_v29 = vld [vmem:[%s1068_s1 + $0x70] ss:$8 sps:$4 sm:$0xff]  }
   0x9   :  { %v95_v25 = vrot.slane %v81_v22, %v903_v18  ;;  %667 = vmatpush3.bf16.msra.mxu1 %v770_v24  ;;  %v745_v30 = vld [vmem:[%s1068_s1 + $0x84] ss:$8 sps:$4 sm:$0xff]   ;;  %v774_v31 = vld [vmem:[%s1070_s3 + $0x10] sm:$0xff]   ;;  %v775_v32 = vld [vmem:[%s1070_s3 + $0x58] sm:$0xff]  }
   0xa   :  { %668 = vmatprep.subr.bf16.mxu1 %v771_v26  ;;  %v747_v33 = vld [vmem:[%s1068_s1 + $0x80] ss:$8 sps:$4 sm:$0xff]   ;;  %v748_v34 = vld [vmem:[%s1068_s1 + $0x94] ss:$8 sps:$4 sm:$0xff]   ;;  %v750_v35 = vld [vmem:[%s1068_s1 + $0x90] ss:$8 sps:$4 sm:$0xff]  }
   0xb   :  { %263 = vmatpush1.bf16.msra.mxu0 %v729_v5  ;;  %290 = vmatprep.mubr.bf16.mxu0 %v95_v25  ;;  %v776_v36 = vld [vmem:[%s1070_s3 + $0x18] sm:$0xff]   ;;  %v751_v37 = vld [vmem:[%s1068_s1 + $0xa4] ss:$8 sps:$4 sm:$0xff]   ;;  %v753_v41 = vld [vmem:[%s1068_s1 + $0xa0] ss:$8 sps:$4 sm:$0xff]  }
   0xc   :  { %264 = vmatprep.subr.bf16.mxu0 %v730_v6  ;;  %v777_v38 = vld [vmem:[%s1070_s3 + $0x60] sm:$0xff]   ;;  %v779_v40 = vld [vmem:[%s1070_s3 + $0x68] sm:$0xff]   ;;  %v754_v42 = vld [vmem:[%s1068_s1 + $0xb4] ss:$8 sps:$4 sm:$0xff]  }
   0xd   :  { %669 = vmatpush3.bf16.msra.mxu1 %v772_v27  ;;  %v778_v39 = vld [vmem:[%s1070_s3 + $0x20] sm:$0xff]   ;;  %v780_v43 = vld [vmem:[%s1070_s3 + $0x28] sm:$0xff]  }
   0xe   :  { %670 = vmatprep.subr.bf16.mxu1 %v773_v28 }
   0xf   :  { %265 = vmatpush1.bf16.msra.mxu0 %v732_v7 }
  0x10   :  { %266 = vmatprep.subr.bf16.mxu0 %v733_v8 }
  0x11   :  { %671 = vmatpush3.bf16.msra.mxu1 %v774_v31 }
  0x12   :  { %672 = vmatprep.subr.bf16.mxu1 %v775_v32 }
  0x13   :  { %267 = vmatpush1.bf16.msra.mxu0 %v735_v12 }
  0x14   :  { %268 = vmatprep.subr.bf16.mxu0 %v736_v13 }
  0x15   :  { %673 = vmatpush3.bf16.msra.mxu1 %v776_v36 }
  0x16   :  { %674 = vmatprep.subr.bf16.mxu1 %v777_v38 }
  0x17   :  { %269 = vmatpush1.bf16.msra.mxu0 %v738_v16 }
  0x18   :  { %270 = vmatprep.subr.bf16.mxu0 %v739_v17 }
  0x19   :  { %675 = vmatpush3.bf16.msra.mxu1 %v778_v39 }
  0x1a   :  { %676 = vmatprep.subr.bf16.mxu1 %v779_v40 }
  0x1b   :  { %271 = vmatpush1.bf16.msra.mxu0 %v741_v19 }
  0x1c   :  { %272 = vmatprep.subr.bf16.mxu0 %v742_v21 }
  0x1f   :  { %273 = vmatpush1.bf16.msra.mxu0 %v744_v29 }
  0x20   :  { %274 = vmatprep.subr.bf16.mxu0 %v745_v30 }
  0x23   :  { %275 = vmatpush1.bf16.msra.mxu0 %v747_v33 }
  0x24   :  { %276 = vmatprep.subr.bf16.mxu0 %v748_v34 }
  0x27   :  { %277 = vmatpush1.bf16.msra.mxu0 %v750_v35 }
  0x28   :  { %278 = vmatprep.subr.bf16.mxu0 %v751_v37 }
  0x29   :  { %12 = vsyncpa [#allocation3], 0  ;;  %v756_v44 = vld [vmem:[%s1068_s1 + $0xb0] ss:$8 sps:$4 sm:$0xff]   ;;  %v757_v45 = vld [vmem:[%s1068_s1 + $0xc4] ss:$8 sps:$4 sm:$0xff]   ;;  %677 = vmatpush3.bf16.msra.mxu1 %v780_v43  ;;  %v88_v53 = vrot.slane %v911_v20, %v903_v18 }
  0x2a   :  { %v759_v46 = vld [vmem:[%s1068_s1 + $0xc0] ss:$8 sps:$4 sm:$0xff]   ;;  %v760_v47 = vld [vmem:[%s1068_s1 + $0xd4] ss:$8 sps:$4 sm:$0xff]   ;;  %v762_v48 = vld [vmem:[%s1068_s1 + $0xd0] ss:$8 sps:$4 sm:$0xff]  }
  0x2b   :  { %279 = vmatpush1.bf16.msra.mxu0 %v753_v41  ;;  %v763_v49 = vld [vmem:[%s1068_s1 + $0xe4] ss:$8 sps:$4 sm:$0xff]   ;;  %v765_v50 = vld [vmem:[%s1068_s1 + $0xe0] ss:$8 sps:$4 sm:$0xff]   ;;  %v766_v51 = vld [vmem:[%s1068_s1 + $0xf4] ss:$8 sps:$4 sm:$0xff]  }
  0x2c   :  { %280 = vmatprep.subr.bf16.mxu0 %v754_v42  ;;  %v768_v52 = vld [vmem:[%s1068_s1 + $0xf0] ss:$8 sps:$4 sm:$0xff]   ;;  %v818_v58 = vmov 0.0   ;;  %v65_v59 = vsub.s32 0, %v894_v14  ;;  %v61_v60 = vld [vmem:[%s1069_s2] sm:$0x3] }
  0x2d   :  { %v781_v54 = vld [vmem:[%s1070_s3 + $0x70] sm:$0xff]   ;;  %v783_v56 = vld [vmem:[%s1070_s3 + $0x78] sm:$0xff]   ;;  %v69_v61 = vsub.s32 1, %v894_v14  ;;  %v785_v9 = vld [vmem:[%s1072_s5] sm:$0xff]   ;;  %vm819_vm0 = vmmov 0   ;;  %vm591_vm1 = vcmask 25600  }
  0x2e   :  { %v782_v55 = vld [vmem:[%s1070_s3 + $0x30] sm:$0xff]   ;;  %678 = vmatprep.subr.bf16.mxu1 %v781_v54  ;;  %v784_v57 = vld [vmem:[%s1070_s3 + $0x38] sm:$0xff]   ;;  %v66_v62 = vrot.slane %v61_v60, %v65_v59  ;;  %v786_v11 = vld [vmem:[%s1072_s5 + $0x8] sm:$0xff]  }
  0x2f   :  { %281 = vmatpush1.bf16.msra.mxu0 %v756_v44  ;;  %679 = vmatpush3.bf16.msra.mxu1 %v782_v55  ;;  %v70_v63 = vrot.slane %v61_v60, %v69_v61  ;;  %v787_v12 = vld [vmem:[%s1072_s5 + $0x10] sm:$0xff]   ;;  %v788_v13 = vld [vmem:[%s1072_s5 + $0x18] sm:$0xff]   ;;  %v789_v14 = vld [vmem:[%s1072_s5 + $0x20] sm:$0xff]  }
  0x30   :  { %282 = vmatprep.subr.bf16.mxu0 %v757_v45  ;;  %680 = vmatprep.subr.bf16.mxu1 %v783_v56  ;;  %v790_v15 = vld [vmem:[%s1072_s5 + $0x28] sm:$0xff]   ;;  %v791_v16 = vld [vmem:[%s1072_s5 + $0x30] sm:$0xff]   ;;  %v792_v17 = vld [vmem:[%s1072_s5 + $0x38] sm:$0xff]   ;;  %s820_s5 = smov [#allocation2]  }
  0x31   :  { %v640_v19 = vld [vmem:[%s1071_s4] ss:$0 sm:$0xff]  ;;  %s599_s22 = sshll.u32 %s820_s5, 4  ;;  %s600_s22 = int_to_ptr.vmem [resolvable:$true] %s599_s22 }
  0x32   :  { %v657_v27 = vld [vmem:[%s1073_s6] ss:$0 sm:$0xff]  ;;  %s793_s4 = scalar_lea.vmem %s600_s22, 32  ;;  %p798_p1 = scmp.lt.s32.totalorder %s600_s22, %s600_s22 }
  0x33   :  { %283 = vmatpush1.bf16.msra.mxu0 %v759_v46  ;;  %681 = vmatpush3.bf16.msra.mxu1 %v784_v57  ;;  %p794_p0 = scmp.ne.s32.totalorder %s600_s22, %s793_s4  ;;  %p799_p2 = scmp.lt.s32.totalorder %s793_s4, %s793_s4 }
  0x34   :  { %284 = vmatprep.subr.bf16.mxu0 %v760_v47  ;;  %697 = vmatprep.subr.bf16.mxu1 %v818_v58 }
  0x35   :  { %p800_p3 = por %p799_p2, %p798_p1 }
  0x37   :  { %285 = vmatpush1.bf16.msra.mxu0 %v762_v48  ;;  %p801_p4 = pnand %p800_p3, %p794_p0 }
  0x38   :  { %286 = vmatprep.subr.bf16.mxu0 %v763_v49 }
  0x3b   :  { %287 = vmatpush1.bf16.msra.mxu0 %v765_v50 }
  0x3c   :  { %288 = vmatprep.subr.bf16.mxu0 %v766_v51 }
  0x3f   :  { %289 = vmatpush1.bf16.msra.mxu0 %v768_v52 }
  0x42   :  { %291 = vmatmul.mubr.bf16.vlgmr.msra.gmra.mrb[0].mxu0 %v88_v53 }
 0x115   :  { %v292_v0 = vpop.f32.mrb[0].mxu0 }
 0x116   :  { %v293_v1 = vadd.f32 %v292_v0, %v66_v62  ;;  %v294_v2 = vpop.f32.mrb[1].mxu0 }
 0x117   :  { %v295_v3 = vadd.f32 %v294_v2, %v70_v63  ;;  %v296_v4 = vpop.f32.mrb[2].mxu0 }
 0x118   :  { %v299_v5 = vmax.f32 %v293_v1, 0.0  ;;  %v297_v6 = vpop.f32.mrb[3].mxu0 }
 0x119   :  { %v300_v7 = vmax.f32 %v295_v3, 0.0 }
 0x11a   :  { %v301_v10 = vpack.c.bf16 %v299_v5, %v299_v5 }
 0x11b   :  { %v302_v8 = vpack.c.bf16 %v300_v7, %v300_v7 }
 0x11d   :  { %470 = vmatprep.mubr.bf16.mxu1 %v302_v8 }
 0x11e   :  { %471 = vmatmul.mubr.bf16.vlgmr.msra.gmra.mrb[0].mxu1 %v301_v10 }
 0x11f   :  { %698 = vmatpush3.bf16.msra.mxu1 %v785_v9  ;;  %713 = vmatprep.mubr.msk.bf16.mxu1 %vm819_vm0, %v818_v58 }
 0x120   :  { %699 = vmatprep.subr.bf16.mxu1 %v818_v58 }
 0x123   :  { %700 = vmatpush3.bf16.msra.mxu1 %v786_v11 }
 0x124   :  { %701 = vmatprep.subr.bf16.mxu1 %v818_v58 }
 0x127   :  { %702 = vmatpush3.bf16.msra.mxu1 %v787_v12 }
 0x128   :  { %703 = vmatprep.subr.bf16.mxu1 %v818_v58 }
 0x12b   :  { %704 = vmatpush3.bf16.msra.mxu1 %v788_v13 }
 0x12c   :  { %705 = vmatprep.subr.bf16.mxu1 %v818_v58 }
 0x12f   :  { %706 = vmatpush3.bf16.msra.mxu1 %v789_v14 }
 0x130   :  { %707 = vmatprep.subr.bf16.mxu1 %v818_v58 }
 0x133   :  { %708 = vmatpush3.bf16.msra.mxu1 %v790_v15 }
 0x134   :  { %709 = vmatprep.subr.bf16.mxu1 %v818_v58 }
 0x137   :  { %710 = vmatpush3.bf16.msra.mxu1 %v791_v16 }
 0x138   :  { %711 = vmatprep.subr.bf16.mxu1 %v818_v58 }
 0x13b   :  { %712 = vmatpush3.bf16.msra.mxu1 %v792_v17 }
 0x1f1   :  { %v682_v18 = vpop.f32.mrb[0].mxu1 }
 0x1f2   :  { %v683_v20 = vpop.f32.mrb[1].mxu1 }
 0x1f3   :  { %v684_v21 = vadd.f32 %v683_v20, %v682_v18  ;;  %v685_v22 = vpop.f32.mrb[2].mxu1 }
 0x1f4   :  { %v686_v23 = vpop.f32.mrb[3].mxu1 }
 0x1f5   :  { %v473_v24 = vadd.f32 %v684_v21, %v640_v19 }
 0x1f7   :  { %v478_v25 = vmax.f32 %v473_v24, 0.0 }
 0x1f9   :  { %v479_v26 = vpack.c.bf16 %v478_v25, %v478_v25 }
 0x1fb   :  { %714 = vmatmul.mubr.bf16.vlgmr.msra.gmra.mrb[4].mxu1 %v479_v26 }
 0x2ce   :  { %v585_v28 = vpop.f32.mrb[4].mxu1 }
 0x2cf   :  { %v586_v29 = vadd.f32 %v657_v27, %v585_v28  ;;  %v715_v30 = vpop.f32.mrb[5].mxu1 }
 0x2d0   :  { %v588_v31 = vpop.f32.mrb[6].mxu1 }
 0x2d1   :  { %v716_v32 = vpop.f32.mrb[7].mxu1  ;;  %592 = vst.msk [vmem:[#allocation2] sm:$0x3] %vm591_vm1, %v586_v29 }
 0x2d2   :  { %804 = shalt.err (!%p801_p4)
}
 0x2d3   :  { %s805_s6 = scalar_lea.hbm %s1074_s7, 32 }
 0x2d4   :  { %p806_p5 = scmp.ne.s32.totalorder %s1074_s7, %s805_s6  ;;  %p809_p6 = scmp.lt.u32.totalorder %s805_s6, %s1074_s7 }
 0x2d6   :  { %p811_p7 = pnand %p809_p6, %p806_p5 }
 0x2d8   :  { %814 = shalt.err (!%p811_p7)
}
 0x2d9   :  { %602 = dma.vmem_to_hbm [thread:$0]  %s600_s22, 32, %s1074_s7, [#allocation3]  }
 0x2da   :  { %815 = dma.done.wait [#allocation3], 32  }
 0x2db   :  { %816 = vsyncadd [#allocation3], 4294967264 }
 0x2dc   :  { %606 = vsyncpa [#allocation3], 1 }

</bundles_post_ra>
